<compile_context>
chip_gen: v5e
topology: v5e:2x2
jax: 0.10.0
libtpu: 0.0.40
codegen_flags: <defaults>
</compile_context>

<pallas_src>
import jax
import jax.numpy as jnp
import numpy as np
from jax import lax
from jax.experimental import pallas as pl
from jax.experimental.pallas import tpu as pltpu


def cbam_kernel(x_ref, w1t_ref, w2t_ref, cmat_ref, sab_ref,
                o_ref, oca_ref, osa_ref):
    x = x_ref[...]                                    # (Bt, C, HW) float32, lane-dense
    Bt, C, HW = x.shape

    # ---------------- Channel attention ----------------
    # AdaptiveMaxPool2d(1) / AdaptiveAvgPool2d(1) == global reductions over the
    # lane-dense HW axis.
    mvec = jnp.max(x, axis=2)                         # (Bt, C)
    avec = jnp.sum(x, axis=2) * (1.0 / HW)            # (Bt, C)

    # Shared SE MLP; both pooling branches fused into one matmul chain with
    # pre-transposed weights (lane-dense MXU outputs).
    pooled = jnp.concatenate([mvec, avec], axis=0)    # (2*Bt, C)
    h = jnp.dot(pooled, w1t_ref[...],
                preferred_element_type=jnp.float32)   # (2*Bt, Cr)
    h = jnp.maximum(h, 0.0)                           # ReLU
    z2 = jnp.dot(h, w2t_ref[...],
                 preferred_element_type=jnp.float32)  # (2*Bt, C)
    z = z2[:Bt] + z2[Bt:]                             # max-branch + avg-branch
    ca = 0.5 * jnp.tanh(0.5 * z) + 0.5                # stable sigmoid (EUP tanh)

    out = x * ca[:, :, None]                          # x * ca   (Bt, C, HW)

    # ---------------- Spatial attention ----------------
    maxc = jnp.max(out, axis=1)                       # max over channels  (Bt, HW)
    avgc = jnp.sum(out, axis=1) * (1.0 / C)           # mean over channels (Bt, HW)
    cat = jnp.concatenate([maxc, avgc], axis=1)       # (Bt, 2*HW), lane concat

    # Conv2d(2 -> 1, k, padding=k//2, bias) — weights + zero padding folded into a
    # host-precomputed (2*HW, HW) matrix; single MXU matmul, no scratch, no relayout.
    conv = jnp.dot(cat, cmat_ref[...],
                   preferred_element_type=jnp.float32) + sab_ref[0]   # (Bt, HW)
    sa = 0.5 * jnp.tanh(0.5 * conv) + 0.5             # stable sigmoid (EUP tanh)

    o_ref[...] = out * sa[:, None, :] + x             # out * sa + residual (lane-dense store)
    oca_ref[...] = ca.reshape(oca_ref.shape)
    osa_ref[...] = sa.reshape(osa_ref.shape)


def _spatial_conv_matrix(sa_w, H, W, k):
    """(2*H*W, H*W) matrix M with M[c*HW + i, o] = conv weight connecting input pixel i
    of map c (0=max, 1=avg) to output pixel o; zero where the k x k window falls
    outside the image (i.e. the zero padding of the 'same' convolution)."""
    p = k // 2
    HW = H * W
    idx = jnp.arange(HW)
    y, xx = idx // W, idx % W
    ki = y[:, None] - y[None, :] + p                  # (HW_in, HW_out): input row - output row
    kj = xx[:, None] - xx[None, :] + p
    valid = (ki >= 0) & (ki < k) & (kj >= 0) & (kj < k)
    w = sa_w.reshape(2, k, k).astype(jnp.float32)
    taps = w[:, jnp.clip(ki, 0, k - 1), jnp.clip(kj, 0, k - 1)]    # (2, HW, HW)
    return jnp.where(valid[None], taps, 0.0).reshape(2 * HW, HW)


def _pick_bt(B, C, HW):
    """Batch elements per grid step: as large as a conservative VMEM budget allows
    (amortizes the ~0.35us/step pipeline overhead), capped at B//2 so the grid has at
    least two steps for v7x megacore sharding; prefers sublane-aligned (x8) values so
    the 2-D ca/sa output blocks stay legal and densely packed."""
    per_b = C * HW * 4 * 2 * 2            # x block + out block, double-buffered, f32
    cap = max(1, (12 << 20) // per_b)     # ~12 MiB for the big blocks: inside every gen's scoped VMEM
    if B >= 2:
        cap = min(cap, B // 2)            # >= 2 grid steps when possible
    cap = max(1, min(cap, B))
    divs = [d for d in range(1, cap + 1) if B % d == 0]
    aligned = [d for d in divs if d % 8 == 0]
    return max(aligned) if aligned else max(divs)


def cbam_block(x, ca_w1, ca_w2, sa_w, sa_b, kernel_size):
    """Pallas CBAMBlock.forward. Returns (out + residual, ca, sa) like the torch module."""
    B, C, H, W = x.shape
    Cr = ca_w1.shape[0]
    k = kernel_size
    HW = H * W

    Bt = _pick_bt(B, C, HW)

    x_flat = x.reshape(B, C, HW).astype(jnp.float32)           # lane-dense main layout
    w1t = ca_w1.reshape(Cr, C).T.astype(jnp.float32)           # (C, Cr)  SE conv1 weight^T
    w2t = ca_w2.reshape(C, Cr).T.astype(jnp.float32)           # (Cr, C)  SE conv2 weight^T
    cmat = _spatial_conv_matrix(sa_w, H, W, k)                  # (2*HW, HW)
    sab = sa_b.reshape(1).astype(jnp.float32)                   # scalar bias (SMEM)

    # ca / sa output layout: sublane-packed 2-D blocks when legal, else (B, 1, *) blocks
    # (whose last two block dims equal the full array dims and are always legal).
    aligned = (Bt % 8 == 0) or (Bt == B)
    if aligned:
        ca_shape, ca_block, ca_map = (B, C), (Bt, C), (lambda b: (b, 0))
        sa_shape, sa_block, sa_map = (B, HW), (Bt, HW), (lambda b: (b, 0))
    else:
        ca_shape, ca_block, ca_map = (B, 1, C), (Bt, 1, C), (lambda b: (b, 0, 0))
        sa_shape, sa_block, sa_map = (B, 1, HW), (Bt, 1, HW), (lambda b: (b, 0, 0))

    out, ca, sa = pl.pallas_call(
        cbam_kernel,
        out_shape=(
            jax.ShapeDtypeStruct((B, C, HW), jnp.float32),
            jax.ShapeDtypeStruct(ca_shape, jnp.float32),
            jax.ShapeDtypeStruct(sa_shape, jnp.float32),
        ),
        grid_spec=pltpu.PrefetchScalarGridSpec(
            num_scalar_prefetch=0,
            grid=(B // Bt,),
            in_specs=[
                pl.BlockSpec((Bt, C, HW), lambda b: (b, 0, 0)),       # x, lane-dense
                pl.BlockSpec((C, Cr), lambda b: (0, 0)),              # SE conv1 weight^T
                pl.BlockSpec((Cr, C), lambda b: (0, 0)),              # SE conv2 weight^T
                pl.BlockSpec((2 * HW, HW), lambda b: (0, 0)),         # folded spatial-conv matrix
                pl.BlockSpec(memory_space=pltpu.MemorySpace.SMEM),    # spatial conv bias
            ],
            out_specs=[
                pl.BlockSpec((Bt, C, HW), lambda b: (b, 0, 0)),
                pl.BlockSpec(ca_block, ca_map),
                pl.BlockSpec(sa_block, sa_map),
            ],
        ),
        # Batch steps are fully independent -> shard across v7x's two TensorCores.
        compiler_params=pltpu.CompilerParams(
            dimension_semantics=("parallel",),
            vmem_limit_bytes=32 * 1024 * 1024),
    )(x_flat, w1t, w2t, cmat, sab)

    return (out.reshape(B, C, H, W),
            ca.reshape(B, C, 1, 1),
            sa.reshape(B, 1, H, W))


def cbam_reference(x, ca_w1, ca_w2, sa_w, sa_b, kernel_size):
    """Pure-JAX reference matching the torch module semantics."""
    p = kernel_size // 2
    mx = jnp.max(x, axis=(2, 3), keepdims=True)
    av = jnp.mean(x, axis=(2, 3), keepdims=True)

    def se(v):  # v: (B, C, 1, 1)
        h = jnp.einsum('bcij,rc->brij', v, ca_w1, precision=lax.Precision.HIGHEST)
        h = jnp.maximum(h, 0.0)
        return jnp.einsum('brij,cr->bcij', h, ca_w2, precision=lax.Precision.HIGHEST)

    ca = jax.nn.sigmoid(se(mx) + se(av))
    out = x * ca
    mc = jnp.max(out, axis=1, keepdims=True)
    ac = jnp.mean(out, axis=1, keepdims=True)
    cat = jnp.concatenate([mc, ac], axis=1)
    conv = lax.conv_general_dilated(
        cat, sa_w, window_strides=(1, 1), padding=[(p, p), (p, p)],
        dimension_numbers=('NCHW', 'OIHW', 'NCHW'),
        precision=lax.Precision.HIGHEST) + sa_b.reshape(1, 1, 1, 1)
    sa = jax.nn.sigmoid(conv)
    return out * sa + x, ca, sa


if __name__ == "__main__":
    # Small shapes consistent with CBAMBlock(channel=C, reduction=4, kernel_size=7).
    # B=16 -> Bt=8, grid=(2,): both v7x TensorCores get work; sublane-aligned ca/sa blocks.
    B, C, H, W = 16, 32, 16, 16
    reduction = 4
    Cr = C // reduction
    kernel_size = 7

    key = jax.random.PRNGKey(0)
    kx, k1, k2, k3, k4 = jax.random.split(key, 5)

    x = jax.random.normal(kx, (B, C, H, W), dtype=jnp.float32)
    # Deterministic parameter init (kaiming-style scaling; synthetic weights).
    ca_w1 = jax.random.normal(k1, (Cr, C), dtype=jnp.float32) * jnp.sqrt(2.0 / C)
    ca_w2 = jax.random.normal(k2, (C, Cr), dtype=jnp.float32) * jnp.sqrt(2.0 / Cr)
    sa_w = jax.random.normal(k3, (1, 2, kernel_size, kernel_size),
                             dtype=jnp.float32) * 0.05
    sa_b = jax.random.normal(k4, (1,), dtype=jnp.float32) * 0.05

    out, ca, sa = cbam_block(x, ca_w1, ca_w2, sa_w, sa_b, kernel_size)
    jax.block_until_ready((out, ca, sa))

    out_ref, ca_ref, sa_ref = cbam_reference(x, ca_w1, ca_w2, sa_w, sa_b, kernel_size)
    # Tolerance covers MXU default-precision f32 matmul passes + EUP tanh sigmoid.
    np.testing.assert_allclose(np.asarray(ca), np.asarray(ca_ref), rtol=3e-3, atol=3e-3)
    np.testing.assert_allclose(np.asarray(sa), np.asarray(sa_ref), rtol=3e-3, atol=3e-3)
    np.testing.assert_allclose(np.asarray(out), np.asarray(out_ref), rtol=3e-3, atol=3e-3)

    print("KERNEL_OK")
</pallas_src>

<mosaic_0001>
module attributes {stable_mosaic.version = 11 : i64} {
  func.func @cbam_kernel(%arg0: i32, %arg1: memref<8x32x256xf32, #tpu.memory_space<vmem>>, %arg2: memref<32x8xf32, #tpu.memory_space<vmem>>, %arg3: memref<8x32xf32, #tpu.memory_space<vmem>>, %arg4: memref<512x256xf32, #tpu.memory_space<vmem>>, %arg5: memref<1xf32, #tpu.memory_space<smem>>, %arg6: memref<8x32x256xf32, #tpu.memory_space<vmem>>, %arg7: memref<8x32xf32, #tpu.memory_space<vmem>>, %arg8: memref<8x256xf32, #tpu.memory_space<vmem>>) attributes {dimension_semantics = [#tpu.dimension_semantics<parallel>], iteration_bounds = array<i64: 2>, scalar_prefetch = 0 : i64, scratch_operands = 0 : i64, tpu.core_type = #tpu.core_type<tc>, window_params = [{transform_indices = @transform_0, window_bounds = array<i64: 8, 32, 256>}, {pipeline_mode = #tpu.pipeline_mode<synchronous>, transform_indices = @transform_1, window_bounds = array<i64: 32, 8>}, {pipeline_mode = #tpu.pipeline_mode<synchronous>, transform_indices = @transform_2, window_bounds = array<i64: 8, 32>}, {pipeline_mode = #tpu.pipeline_mode<synchronous>, transform_indices = @transform_3, window_bounds = array<i64: 512, 256>}, {transform_indices = @transform_4, window_bounds = array<i64: 1>}, {transform_indices = @transform_5, window_bounds = array<i64: 8, 32, 256>}, {transform_indices = @transform_6, window_bounds = array<i64: 8, 32>}, {transform_indices = @transform_7, window_bounds = array<i64: 8, 256>}]} {
    %c0 = arith.constant 0 : index
    %c0_0 = arith.constant 0 : index
    %c0_1 = arith.constant 0 : index
    %0 = vector.load %arg1[%c0, %c0_0, %c0_1] : memref<8x32x256xf32, #tpu.memory_space<vmem>>, vector<8x32x256xf32>
    %cst = arith.constant dense<0xFF800000> : vector<8x32xf32>
    %1 = vector.multi_reduction <maximumf>, %0, %cst [2] : vector<8x32x256xf32> to vector<8x32xf32>
    %cst_2 = arith.constant dense<0.000000e+00> : vector<8x32xf32>
    %2 = vector.multi_reduction <add>, %0, %cst_2 [2] : vector<8x32x256xf32> to vector<8x32xf32>
    %cst_3 = arith.constant 3.906250e-03 : f32
    %3 = vector.broadcast %cst_3 : f32 to vector<8x32xf32>
    %4 = arith.mulf %2, %3 : vector<8x32xf32>
    %5 = tpu.concatenate %1, %4 in 0 : vector<8x32xf32>, vector<8x32xf32> -> vector<16x32xf32>
    %c0_4 = arith.constant 0 : index
    %c0_5 = arith.constant 0 : index
    %6 = vector.load %arg2[%c0_4, %c0_5] : memref<32x8xf32, #tpu.memory_space<vmem>>, vector<32x8xf32>
    %cst_6 = arith.constant dense<0.000000e+00> : vector<16x8xf32>
    %7 = tpu.matmul %5, %6, %cst_6 {dimension_numbers = #tpu.dot_dimension_numbers<[1], [0], [0], [1], [0, 0, 1, 1], [], []>} : vector<16x32xf32>, vector<32x8xf32>, vector<16x8xf32> -> vector<16x8xf32>
    %cst_7 = arith.constant 0.000000e+00 : f32
    %8 = vector.broadcast %cst_7 : f32 to vector<16x8xf32>
    %9 = arith.maximumf %7, %8 : vector<16x8xf32>
    %c0_8 = arith.constant 0 : index
    %c0_9 = arith.constant 0 : index
    %10 = vector.load %arg3[%c0_8, %c0_9] : memref<8x32xf32, #tpu.memory_space<vmem>>, vector<8x32xf32>
    %cst_10 = arith.constant dense<0.000000e+00> : vector<16x32xf32>
    %11 = tpu.matmul %9, %10, %cst_10 {dimension_numbers = #tpu.dot_dimension_numbers<[1], [0], [0], [1], [0, 0, 1, 1], [], []>} : vector<16x8xf32>, vector<8x32xf32>, vector<16x32xf32> -> vector<16x32xf32>
    %12 = vector.extract_strided_slice %11 {offsets = [0, 0], sizes = [8, 32], strides = [1, 1]} : vector<16x32xf32> to vector<8x32xf32>
    %13 = vector.extract_strided_slice %11 {offsets = [8, 0], sizes = [8, 32], strides = [1, 1]} : vector<16x32xf32> to vector<8x32xf32>
    %14 = arith.addf %12, %13 : vector<8x32xf32>
    %cst_11 = arith.constant 5.000000e-01 : f32
    %15 = vector.broadcast %cst_11 : f32 to vector<8x32xf32>
    %16 = arith.mulf %15, %14 : vector<8x32xf32>
    %17 = math.tanh %16 : vector<8x32xf32>
    %cst_12 = arith.constant 5.000000e-01 : f32
    %18 = vector.broadcast %cst_12 : f32 to vector<8x32xf32>
    %19 = arith.mulf %18, %17 : vector<8x32xf32>
    %cst_13 = arith.constant 5.000000e-01 : f32
    %20 = vector.broadcast %cst_13 : f32 to vector<8x32xf32>
    %21 = arith.addf %19, %20 : vector<8x32xf32>
    %22 = vector.shape_cast %21 : vector<8x32xf32> to vector<8x32x1xf32>
    %23 = vector.broadcast %22 : vector<8x32x1xf32> to vector<8x32x256xf32>
    %24 = arith.mulf %0, %23 : vector<8x32x256xf32>
    %cst_14 = arith.constant dense<0xFF800000> : vector<8x256xf32>
    %25 = vector.multi_reduction <maximumf>, %24, %cst_14 [1] : vector<8x32x256xf32> to vector<8x256xf32>
    %cst_15 = arith.constant dense<0.000000e+00> : vector<8x256xf32>
    %26 = vector.multi_reduction <add>, %24, %cst_15 [1] : vector<8x32x256xf32> to vector<8x256xf32>
    %cst_16 = arith.constant 3.125000e-02 : f32
    %27 = vector.broadcast %cst_16 : f32 to vector<8x256xf32>
    %28 = arith.mulf %26, %27 : vector<8x256xf32>
    %29 = tpu.concatenate %25, %28 in 1 : vector<8x256xf32>, vector<8x256xf32> -> vector<8x512xf32>
    %c0_17 = arith.constant 0 : index
    %c0_18 = arith.constant 0 : index
    %30 = vector.load %arg4[%c0_17, %c0_18] : memref<512x256xf32, #tpu.memory_space<vmem>>, vector<512x256xf32>
    %cst_19 = arith.constant dense<0.000000e+00> : vector<8x256xf32>
    %31 = tpu.matmul %29, %30, %cst_19 {dimension_numbers = #tpu.dot_dimension_numbers<[1], [0], [0], [1], [0, 0, 1, 1], [], []>} : vector<8x512xf32>, vector<512x256xf32>, vector<8x256xf32> -> vector<8x256xf32>
    %c0_20 = arith.constant 0 : index
    %32 = memref.load %arg5[%c0_20] : memref<1xf32, #tpu.memory_space<smem>>
    %33 = vector.broadcast %32 : f32 to vector<8x256xf32>
    %34 = arith.addf %31, %33 : vector<8x256xf32>
    %cst_21 = arith.constant 5.000000e-01 : f32
    %35 = vector.broadcast %cst_21 : f32 to vector<8x256xf32>
    %36 = arith.mulf %35, %34 : vector<8x256xf32>
    %37 = math.tanh %36 : vector<8x256xf32>
    %cst_22 = arith.constant 5.000000e-01 : f32
    %38 = vector.broadcast %cst_22 : f32 to vector<8x256xf32>
    %39 = arith.mulf %38, %37 : vector<8x256xf32>
    %cst_23 = arith.constant 5.000000e-01 : f32
    %40 = vector.broadcast %cst_23 : f32 to vector<8x256xf32>
    %41 = arith.addf %39, %40 : vector<8x256xf32>
    %42 = vector.shape_cast %41 : vector<8x256xf32> to vector<8x1x256xf32>
    %43 = vector.broadcast %42 : vector<8x1x256xf32> to vector<8x32x256xf32>
    %44 = arith.mulf %24, %43 : vector<8x32x256xf32>
    %45 = arith.addf %44, %0 : vector<8x32x256xf32>
    %c0_24 = arith.constant 0 : index
    %c0_25 = arith.constant 0 : index
    %c0_26 = arith.constant 0 : index
    %46 = vector.load %arg6[%c0_24, %c0_25, %c0_26] : memref<8x32x256xf32, #tpu.memory_space<vmem>>, vector<8x32x256xf32>
    tpu.vector_store %arg6[%c0_24, %c0_25, %c0_26], %45 {strides = array<i32>} : memref<8x32x256xf32, #tpu.memory_space<vmem>>, vector<8x32x256xf32>,
    %c0_27 = arith.constant 0 : index
    %c0_28 = arith.constant 0 : index
    %47 = vector.load %arg7[%c0_27, %c0_28] : memref<8x32xf32, #tpu.memory_space<vmem>>, vector<8x32xf32>
    tpu.vector_store %arg7[%c0_27, %c0_28], %21 {strides = array<i32>} : memref<8x32xf32, #tpu.memory_space<vmem>>, vector<8x32xf32>,
    %c0_29 = arith.constant 0 : index
    %c0_30 = arith.constant 0 : index
    %48 = vector.load %arg8[%c0_29, %c0_30] : memref<8x256xf32, #tpu.memory_space<vmem>>, vector<8x256xf32>
    tpu.vector_store %arg8[%c0_29, %c0_30], %41 {strides = array<i32>} : memref<8x256xf32, #tpu.memory_space<vmem>>, vector<8x256xf32>,
    return
  }
  func.func @transform_0(%arg0: i32) -> (i32, i32, i32) {
    %c0_i32 = arith.constant 0 : i32
    %c0_i32_0 = arith.constant 0 : i32
    %c0_i32_1 = arith.constant 0 : i32
    return %arg0, %c0_i32, %c0_i32_0 : i32, i32, i32
  }
  func.func @transform_1(%arg0: i32) -> (i32, i32) {
    %c0_i32 = arith.constant 0 : i32
    %c0_i32_0 = arith.constant 0 : i32
    %c0_i32_1 = arith.constant 0 : i32
    return %c0_i32, %c0_i32_0 : i32, i32
  }
  func.func @transform_2(%arg0: i32) -> (i32, i32) {
    %c0_i32 = arith.constant 0 : i32
    %c0_i32_0 = arith.constant 0 : i32
    %c0_i32_1 = arith.constant 0 : i32
    return %c0_i32, %c0_i32_0 : i32, i32
  }
  func.func @transform_3(%arg0: i32) -> (i32, i32) {
    %c0_i32 = arith.constant 0 : i32
    %c0_i32_0 = arith.constant 0 : i32
    %c0_i32_1 = arith.constant 0 : i32
    return %c0_i32, %c0_i32_0 : i32, i32
  }
  func.func @transform_4(%arg0: i32) -> i32 {
    %c0_i32 = arith.constant 0 : i32
    %c0_i32_0 = arith.constant 0 : i32
    return %c0_i32 : i32
  }
  func.func @transform_5(%arg0: i32) -> (i32, i32, i32) {
    %c0_i32 = arith.constant 0 : i32
    %c0_i32_0 = arith.constant 0 : i32
    %c0_i32_1 = arith.constant 0 : i32
    return %arg0, %c0_i32, %c0_i32_0 : i32, i32, i32
  }
  func.func @transform_6(%arg0: i32) -> (i32, i32) {
    %c0_i32 = arith.constant 0 : i32
    %c0_i32_0 = arith.constant 0 : i32
    return %arg0, %c0_i32 : i32, i32
  }
  func.func @transform_7(%arg0: i32) -> (i32, i32) {
    %c0_i32 = arith.constant 0 : i32
    %c0_i32_0 = arith.constant 0 : i32
    return %arg0, %c0_i32 : i32, i32
  }
}

</mosaic_0001>

<bundles_post_ra>
// kernel: tpu_custom_call.1
= control target key start
LH: loop header
LB: loop body
LE: loop exit
PB: predicated region body
PF: predicated region fallthrough
CT: control target
= control target key end

     0   :  { %s4346_s0 = inlined_call_operand.hbm [shape: f32[16,32,256], index: 0, kind: input, shape index: {}]   ;;  %s4347_s1 = inlined_call_operand.vmem [shape: f32[32,8], index: 1, kind: input, shape index: {}]   ;;  %s4348_s2 = inlined_call_operand.vmem [shape: f32[8,32], index: 2, kind: input, shape index: {}]   ;;  %s4349_s3 = inlined_call_operand.hbm [shape: f32[512,256], index: 3, kind: input, shape index: {}]   ;;  %s4350_s4 = inlined_call_operand.<no memory space> [shape: f32[1], index: 4, kind: input, shape index: {}]   ;;  %s4351_s5 = inlined_call_operand.hbm [shape: f32[16,32,256], index: 5, kind: output, shape index: {0}]   ;;  %s4352_s6 = inlined_call_operand.hbm [shape: f32[16,32], index: 6, kind: output, shape index: {1}]   ;;  %s4353_s7 = inlined_call_operand.hbm [shape: f32[16,256], index: 7, kind: output, shape index: {2}]  }
   0x1   :  { %4419 = sst [smem:[#allocation76_spill]] %s4346_s0 }
   0x2   :  { %4420 = sst [smem:[#allocation77_spill]] %s4347_s1 }
   0x3   :  { %13 = sst [smem:[#allocation2]] %s4350_s4 }
   0x4   :  { %14 = vsyncpa [#allocation4], 0 }
   0x5   :  { %16 = vsyncpa [#allocation4 + $0x1], 0 }
   0x6   :  { %17 = vsyncpa [#allocation7], 0 }
   0x7   :  { %18 = vsyncpa [#allocation5], 0 }
   0x8   :  { %20 = vsyncpa [#allocation5 + $0x1], 0 }
   0x9   :  { %21 = vsyncpa [#allocation10], 0 }
   0xa   :  { %23 = vsyncpa [#allocation10 + $0x1], 0  ;;  %s2773_s26 = smov 0   ;;  %s2775_s27 = smov 0  }
   0xb   :  { %s2777_s28 = smov 0   ;;  %s2779_s29 = smov 0  }
   0xc LB: > { %s2794_s4 = sadd.s32 4294967295, %s2723_s29   ;;  %s4354_s30 = sadd.s32 4294967294, %s2723_s29   ;;  %s2723_s29 = sphi %s2779_s29, %s4562_s29   ;;  %s2719_s28 = sphi %s2777_s28, %s4561_s28   ;;  %s2715_s27 = sphi %s2775_s27, %s4560_s27   ;;  %s2711_s26 = sphi %s2773_s26, %s4559_s26  }
   0xd   : > { %p49_p0 = scmp.ne.s32.totalorder %s2715_s27, %s2711_s26  ;;  %p50_p1 = scmp.eq.s32.totalorder %s2794_s4, 0 }
   0xe   : > { %p157_p2 = scmp.eq.s32.totalorder %s2794_s4, 1  ;;  %p163_p3 = scmp.eq.s32.totalorder %s4354_s30, 1 }
   0xf   : > { %p2805_p4 = por %p50_p1, %p49_p0  ;;  %p2281_p5 = scmp.ge.s32.totalorder %s2723_s29, 1 }
  0x10   : > { %p2810_p6 = por %p163_p3, %p49_p0  ;;  %p222_p7 = scmp.lt.s32.totalorder %s2723_s29, 3 }
  0x11   : > { %s239_s12 = sshll.u32 %s4349_s3, 4  ;;  %s2725_s14 = smov [#allocation6]   ;;  %s240_s12 = int_to_ptr.hbm [resolvable:$true] %s239_s12 }
  0x12   : > { %p2818_p8 = pnand %p2281_p5, %p222_p7  ;;  %s241_s15 = sshll.u32 %s2725_s14, 4  ;;  %s242_s15 = int_to_ptr.vmem [resolvable:$true] %s241_s15 }
  0x13   : > { %s2828_s16 = sadd.s32 1, %s2723_s29   ;;  %s4355_s17 = smov 256  }
  0x14   : > { %p2326_p9 = pneg %p2818_p8  ;;  %s4356_s18 = smov 16  }
  0x15   : > { %s33_s19 = ssub.s32 %s2723_s29, %s2828_s16  ;;  %s36_s20 = sadd.s32 1, %s2719_s28 }
  0x16   : > { %p2327_p10 = pnand %p2326_p9, %p50_p1  ;;  %p34_p12 = scmp.eq.s32.totalorder %s33_s19, 0 }
  0x17   : > { %p43_p13 = scmp.ne.s32.totalorder %s2719_s28, %s2715_s27  ;;  %p44_p0 = scmp.eq.s32.totalorder %s2723_s29, 0 }
  0x18   : > { %2329 = dma.hbm_to_vmem [thread:$0]  (!%p2327_p10), %s240_s12, 16384, %s242_s15, [#allocation7], %s4355_s17, %s4355_s17, %s4356_s18  }
  0x19   : > { %s2840_s21 = scalar_select %p34_p12, %s2719_s28, %s36_s20  }
  0x1a   : > { %p2844_p3 = por %p157_p2, %p43_p13  ;;  %p2345_p5 = scmp.lt.s32.totalorder %s2723_s29, 2 }
  0x1b   : > { %s258_s23 = sand.u32 1, %s2719_s28   ;;  %s2310_s24 = sshll.u32 %s2723_s29, 9 }
  0x1c   : > { %p45_p7 = por %p44_p0, %p43_p13  ;;  %s2284_s25 = sshll.u32 %s258_s23, 9 }
  0x1d   : > { %s4425_s0 = sld [smem:[#allocation76_spill]]  ;;  %s262_s15 = scalar_lea.vmem [#allocation3], %s2284_s25 }
  0x1e   : > { %s271_s19 = sshll.u32 %s262_s15, 4  ;;  %p2854_p9 = pnand %p2345_p5, %p45_p7  ;;  %s272_s19 = int_to_ptr.vmem [resolvable:$true] %s271_s19 }
  0x1f   : > { %s259_s30 = scalar_lea.sflag [#allocation4], %s258_s23 }
  0x20   : > { %p2567_p10 = pneg %p2854_p9 }
  0x23   : > { %s268_s12 = scalar_lea.hbm %s4425_s0, %s2310_s24  ;;  %s2570_s25 = scalar_lea.hbm %s4425_s0, 1024 }
  0x24   : > { %s269_s14 = sshll.u32 %s268_s12, 4  ;;  %s270_s14 = int_to_ptr.hbm [resolvable:$true] %s269_s14 }
  0x25   : > { %s2563_s17 = sshra.s32 %s270_s14, 4  ;;  %s2564_s17 = int_to_ptr.hbm [resolvable:$true] %s2563_s17 }
  0x26   : > { %s2565_s18 = scalar_lea.hbm %s2564_s17, 512  ;;  %p2571_p0 = scmp.lt.s32.totalorder %s2564_s17, %s4425_s0 }
  0x27   : > { %p2566_p2 = scmp.ne.s32.totalorder %s2564_s17, %s2565_s18  ;;  %p2572_p5 = scmp.lt.s32.totalorder %s2570_s25, %s2565_s18 }
  0x29   : > { %p2568_p12 = pnand %p2567_p10, %p2566_p2  ;;  %p2573_p7 = por %p2572_p5, %p2571_p0 }
  0x2b   : > { %p2569_p13 = pneg %p2568_p12 }
  0x2d   : > { %p2574_p11 = pnand %p2573_p7, %p2569_p13 }
  0x2f   : > { %2577 = shalt.err (!%p2574_p11)
}
  0x30   : > { %s4427_s23 = smov 16   ;;  %s4428_s15 = smov 256  }
  0x31   : > { %2333 = dma.hbm_to_vmem [thread:$0]  (!%p2854_p9), %s270_s14, 8192, %s272_s19, %s259_s30, %s4428_s15, %s4428_s15, %s4427_s23  }
  0x32   : > { %283 = sbr.rel (%p2818_p8) target bundleno = 1160 (0x488), region = 40 }
  0x37   : > { %s2874_s24 = sand.u32 1, %s2715_s27  }
  0x38   : > { %s4418_s17 = sshll.u32 %s2874_s24, 9  ;;  %s286_s18 = scalar_lea.sflag [#allocation4], %s2874_s24 }
  0x39   : > { %s2880_s10 = scalar_lea.vmem [#allocation3], %s4418_s17 }
  0x3a   : > { %2694 = dma.done.wait (%p2805_p4), %s286_s18, 8192  }
  0x3b   : > { %2696 = vsyncadd (%p2805_p4), %s286_s18, 4294959104 }
  0x3c   : > { %2698 = dma.done.wait (%p50_p1), [#allocation7], 16384  }
  0x3d   : > { %2700 = vsyncadd (%p50_p1), [#allocation7], 4294950912  ;;  %v2891_v0 = vld [vmem:[%s2880_s10 + $0x40] sm:$0xff]  ;;  %v2894_v1 = vld [vmem:[%s2880_s10 + $0x48] sm:$0xff]  ;;  %vm663_vm0 = vcmask 130112   ;;  %vm667_vm1 = vcmask 195712  }
  0x3e   : > { %v2897_v2 = vld [vmem:[%s2880_s10 + $0x20] sm:$0xff]  ;;  %v414_v3 = vmax.f32 %v2891_v0, %v2894_v1  ;;  %v2902_v4 = vld [vmem:[%s2880_s10 + $0x28] sm:$0xff]  ;;  %v2915_v9 = vld [vmem:[%s2880_s10 + $0x50] sm:$0xff]  ;;  %vm671_vm2 = vcmask 261312   ;;  %vm722_vm3 = vcmask 1041409   ;;  %vm724_vm4 = vcmask 1042434  }
  0x3f   : > { %v2905_v5 = vld [vmem:[%s2880_s10] sm:$0xff]  ;;  %v2908_v6 = vld [vmem:[%s2880_s10 + $0x8] sm:$0xff]  ;;  %v408_v7 = vmax.f32 %v2897_v2, %v2902_v4  ;;  %v2918_v10 = vld [vmem:[%s2880_s10 + $0x58] sm:$0xff]  ;;  %vm726_vm5 = vcmask 1043459   ;;  %s4431_s1 = sld [smem:[#allocation77_spill]]  ;;  %vm728_vm6 = vcmask 1044484  }
  0x40   : > { %v402_v8 = vmax.f32 %v2905_v5, %v2908_v6  ;;  %415 = vmax.xlane.f32.xlu1 %v414_v3  ;;  %v2921_v11 = vld [vmem:[%s2880_s10 + $0x60] sm:$0xff]  ;;  %v2924_v12 = vld [vmem:[%s2880_s10 + $0x68] sm:$0xff]  ;;  %v2927_v13 = vld [vmem:[%s2880_s10 + $0x10] sm:$0xff]  ;;  %v417_v15 = vmax.f32 %v2915_v9, %v2918_v10  ;;  %vm730_vm7 = vcmask 1045509   ;;  %vm732_vm8 = vcmask 1046534   ;;  %s2292_s15 = sshll.u32 %s2874_s24, 3 }
  0x41   : > { %409 = vmax.xlane.f32.xlu2 %v408_v7  ;;  %v2930_v14 = vld [vmem:[%s2880_s10 + $0x18] sm:$0xff]  ;;  %v420_v16 = vmax.f32 %v2921_v11, %v2924_v12  ;;  %v2939_v18 = vld [vmem:[%s2880_s10 + $0x90] sm:$0xff]  ;;  %v2951_v22 = vld [vmem:[%s2880_s10 + $0x80] sm:$0xff]  ;;  %vm734_vm9 = vcmask 1047559   ;;  %vm835_vm10 = vcmask 261120   ;;  %vm866_vm11 = vcmask 64512  }
  0x42   : > { %403 = vmax.xlane.f32.xlu0 %v402_v8  ;;  %v405_v17 = vmax.f32 %v2927_v13, %v2930_v14  ;;  %v2942_v19 = vld [vmem:[%s2880_s10 + $0x98] sm:$0xff]  ;;  %v2945_v20 = vld [vmem:[%s2880_s10 + $0x30] sm:$0xff]  ;;  %v2954_v23 = vld [vmem:[%s2880_s10 + $0x88] sm:$0xff]  ;;  %s3400_s18 = scalar_lea.vmem [#allocation9], %s2292_s15  ;;  %s2304_s30 = sshll.u32 %s2794_s4, 3 }
  0x43   : > { %v2948_v21 = vld [vmem:[%s2880_s10 + $0x38] sm:$0xff]  ;;  %v429_v24 = vmax.f32 %v2939_v18, %v2942_v19  ;;  %v426_v26 = vmax.f32 %v2951_v22, %v2954_v23  ;;  %v2963_v27 = vld [vmem:[%s2880_s10 + $0xa0] sm:$0xff]  ;;  %v2966_v28 = vld [vmem:[%s2880_s10 + $0xa8] sm:$0xff]  ;;  %s4050_s8 = sld [smem:[#allocation2]]  ;;  %s2117_s19 = scalar_lea.hbm %s4352_s6, %s2304_s30 }
  0x44   : > { %v411_v25 = vmax.f32 %v2945_v20, %v2948_v21  ;;  %v2969_v29 = vld [vmem:[%s2880_s10 + $0xc0] sm:$0xff]  ;;  %v2972_v30 = vld [vmem:[%s2880_s10 + $0xc8] sm:$0xff]  ;;  %v2975_v31 = vld [vmem:[%s2880_s10 + $0x70] sm:$0xff]  ;;  %v432_v33 = vmax.f32 %v2963_v27, %v2966_v28  ;;  %s2083_s20 = sand.u32 1, %s2794_s4   ;;  %s2119_s25 = sshll.u32 %s3400_s18, 4  ;;  %s2120_s25 = int_to_ptr.vmem [resolvable:$true] %s2119_s25 }
  0x45   : > { %v2978_v32 = vld [vmem:[%s2880_s10 + $0x78] sm:$0xff]  ;;  %v438_v34 = vmax.f32 %v2969_v29, %v2972_v30  ;;  %v2987_v36 = vld [vmem:[%s2880_s10 + $0xb0] sm:$0xff]  ;;  %v2993_v38 = vld [vmem:[%s2880_s10 + $0xe0] sm:$0xff]  ;;  %s2121_s11 = sshll.u32 %s2117_s19, 4  ;;  %s4057_s12 = scalar_lea.sflag [#allocation10], %s2083_s20  ;;  %s2122_s11 = int_to_ptr.hbm [resolvable:$true] %s2121_s11 }
  0x46   : > { %v423_v35 = vmax.f32 %v2975_v31, %v2978_v32  ;;  %v2990_v37 = vld [vmem:[%s2880_s10 + $0xb8] sm:$0xff]  ;;  %v2996_v39 = vld [vmem:[%s2880_s10 + $0xe8] sm:$0xff]  ;;  %v2999_v40 = vld [vmem:[%s2880_s10 + $0xd0] sm:$0xff]  ;;  %s2607_s23 = sshra.s32 %s2122_s11, 4  ;;  %s2608_s23 = int_to_ptr.hbm [resolvable:$true] %s2607_s23 }
  0x47   : > { %v3002_v41 = vld [vmem:[%s2880_s10 + $0xd8] sm:$0xff]  ;;  %v435_v42 = vmax.f32 %v2987_v36, %v2990_v37  ;;  %v444_v43 = vmax.f32 %v2993_v38, %v2996_v39  ;;  %v3011_v45 = vld [vmem:[%s2880_s10 + $0x110] sm:$0xff]  ;;  %v3023_v49 = vld [vmem:[%s2880_s10 + $0x100] sm:$0xff]  ;;  %s2609_s15 = scalar_lea.hbm %s2608_s23, 8  ;;  %p2614_p11 = scmp.lt.s32.totalorder %s2608_s23, %s4352_s6 }
  0x48   : > { %418 = vmax.xlane.f32.xlu1 %v417_v15  ;;  %v441_v44 = vmax.f32 %v2999_v40, %v3002_v41  ;;  %v3014_v46 = vld [vmem:[%s2880_s10 + $0x118] sm:$0xff]  ;;  %v3017_v47 = vld [vmem:[%s2880_s10 + $0xf0] sm:$0xff]  ;;  %v3026_v50 = vld [vmem:[%s2880_s10 + $0x108] sm:$0xff]  ;;  %p2610_p1 = scmp.ne.s32.totalorder %s2608_s23, %s2609_s15 }
  0x49   : > { %421 = vmax.xlane.f32.xlu2 %v420_v16  ;;  %v3020_v48 = vld [vmem:[%s2880_s10 + $0xf8] sm:$0xff]  ;;  %v453_v51 = vmax.f32 %v3011_v45, %v3014_v46  ;;  %v450_v53 = vmax.f32 %v3023_v49, %v3026_v50  ;;  %v3035_v54 = vld [vmem:[%s2880_s10 + $0x140] sm:$0xff]  ;;  %v3038_v55 = vld [vmem:[%s2880_s10 + $0x148] sm:$0xff] }
  0x4a   : > { %406 = vmax.xlane.f32.xlu0 %v405_v17  ;;  %v447_v52 = vmax.f32 %v3017_v47, %v3020_v48  ;;  %v3041_v56 = vld [vmem:[%s2880_s10 + $0x150] sm:$0xff]  ;;  %v3044_v57 = vld [vmem:[%s2880_s10 + $0x158] sm:$0xff]  ;;  %v3047_v58 = vld [vmem:[%s2880_s10 + $0x120] sm:$0xff]  ;;  %v462_v60 = vmax.f32 %v3035_v54, %v3038_v55  ;;  %p2611_p4 = pnand %p2610_p1, %p2844_p3 }
  0x4b   : > { %v3050_v59 = vld [vmem:[%s2880_s10 + $0x128] sm:$0xff]  ;;  %v465_v61 = vmax.f32 %v3041_v56, %v3044_v57  ;;  %v3059_v63 = vld [vmem:[%s2880_s10 + $0x160] sm:$0xff]  ;;  %v3071_v15 = vld [vmem:[%s2880_s10 + $0x130] sm:$0xff] }
  0x4c   : > { %v456_v62 = vmax.f32 %v3047_v58, %v3050_v59  ;;  %v3062_v3 = vld [vmem:[%s2880_s10 + $0x168] sm:$0xff]  ;;  %v3065_v7 = vld [vmem:[%s2880_s10 + $0x180] sm:$0xff]  ;;  %v3074_v16 = vld [vmem:[%s2880_s10 + $0x138] sm:$0xff]  ;;  %p2612_p8 = pneg %p2611_p4 }
  0x4d   : > { %v3068_v8 = vld [vmem:[%s2880_s10 + $0x188] sm:$0xff]  ;;  %v468_v17 = vmax.f32 %v3059_v63, %v3062_v3 }
  0x50   : > { %430 = vmax.xlane.f32.xlu1 %v429_v24  ;;  %v474_v24 = vmax.f32 %v3065_v7, %v3068_v8 }
  0x51   : > { %412 = vmax.xlane.f32.xlu2 %v411_v25  ;;  %v459_v25 = vmax.f32 %v3071_v15, %v3074_v16 }
  0x52   : > { %427 = vmax.xlane.f32.xlu0 %v426_v26  ;;  %v3083_v26 = vld [vmem:[%s2880_s10 + $0x170] sm:$0xff] }
  0x58   : > { %433 = vmax.xlane.f32.xlu1 %v432_v33  ;;  %v3086_v33 = vld [vmem:[%s2880_s10 + $0x178] sm:$0xff] }
  0x59   : > { %439 = vmax.xlane.f32.xlu2 %v438_v34  ;;  %v3089_v34 = vld [vmem:[%s2880_s10 + $0x1a0] sm:$0xff] }
  0x5a   : > { %424 = vmax.xlane.f32.xlu0 %v423_v35  ;;  %v3092_v35 = vld [vmem:[%s2880_s10 + $0x1a8] sm:$0xff] }
  0x60   : > { %436 = vmax.xlane.f32.xlu1 %v435_v42  ;;  %v3095_v42 = vld [vmem:[%s2880_s10 + $0x190] sm:$0xff] }
  0x61   : > { %445 = vmax.xlane.f32.xlu2 %v444_v43  ;;  %v3098_v43 = vld [vmem:[%s2880_s10 + $0x198] sm:$0xff] }
  0x62   : > { %442 = vmax.xlane.f32.xlu0 %v441_v44  ;;  %v471_v44 = vmax.f32 %v3083_v26, %v3086_v33 }
  0x68   : > { %454 = vmax.xlane.f32.xlu1 %v453_v51  ;;  %v480_v51 = vmax.f32 %v3089_v34, %v3092_v35 }
  0x69   : > { %448 = vmax.xlane.f32.xlu2 %v447_v52  ;;  %v477_v52 = vmax.f32 %v3095_v42, %v3098_v43 }
  0x6a   : > { %451 = vmax.xlane.f32.xlu0 %v450_v53  ;;  %v3107_v53 = vld [vmem:[%s2880_s10 + $0x1d0] sm:$0xff] }
  0x70   : > { %463 = vmax.xlane.f32.xlu1 %v462_v60  ;;  %v3110_v60 = vld [vmem:[%s2880_s10 + $0x1d8] sm:$0xff] }
  0x71   : > { %466 = vmax.xlane.f32.xlu2 %v465_v61  ;;  %4429 = vst [vmem:[#allocation16_spill] sm:$0xff] %v3110_v60  ;;  %v3113_v61 = vld [vmem:[%s2880_s10 + $0x1c0] sm:$0xff] }
  0x72   : > { %457 = vmax.xlane.f32.xlu0 %v456_v62  ;;  %v3116_v62 = vld [vmem:[%s2880_s10 + $0x1c8] sm:$0xff] }
  0x78   : > { %469 = vmax.xlane.f32.xlu1 %v468_v17  ;;  %v489_v17 = vmax.f32 %v3107_v53, %v3110_v60  ;;  %v3131_v60 = vld [vmem:[%s2880_s10 + $0x1e0] sm:$0xff] }
  0x79   : > { %475 = vmax.xlane.f32.xlu2 %v474_v24  ;;  %v498_v24 = vadd.f32 %v2908_v6, %v2905_v5  ;;  %v3134_v5 = vld [vmem:[%s2880_s10 + $0x1e8] sm:$0xff]  ;;  %v3137_v6 = vld [vmem:[%s2880_s10 + $0x1b0] sm:$0xff] }
  0x7a   : > { %460 = vmax.xlane.f32.xlu0 %v459_v25  ;;  %v486_v25 = vmax.f32 %v3113_v61, %v3116_v62 }
  0x80   : > { %472 = vmax.xlane.f32.xlu1 %v471_v44  ;;  %v510_v44 = vadd.f32 %v2894_v1, %v2891_v0  ;;  %v492_v0 = vmax.f32 %v3131_v60, %v3134_v5  ;;  %v504_v1 = vadd.f32 %v2902_v4, %v2897_v2  ;;  %v3158_v2 = vld [vmem:[%s2880_s10 + $0x1f8] sm:$0xff]  ;;  %v507_v4 = vadd.f32 %v2948_v21, %v2945_v20 }
  0x81   : > { %481 = vmax.xlane.f32.xlu2 %v480_v51  ;;  %v513_v51 = vadd.f32 %v2918_v10, %v2915_v9  ;;  %v522_v10 = vadd.f32 %v2954_v23, %v2951_v22 }
  0x82   : > { %478 = vmax.xlane.f32.xlu0 %v477_v52  ;;  %v501_v52 = vadd.f32 %v2930_v14, %v2927_v13  ;;  %v525_v13 = vadd.f32 %v2942_v19, %v2939_v18  ;;  %v516_v14 = vadd.f32 %v2924_v12, %v2921_v11  ;;  %v534_v11 = vadd.f32 %v2972_v30, %v2969_v29 }
  0x83   : > { %v537_v12 = vadd.f32 %v3002_v41, %v2999_v40  ;;  %v528_v18 = vadd.f32 %v2966_v28, %v2963_v27  ;;  %v658_v19 = vlaneseq  ;;  %v531_v29 = vadd.f32 %v2990_v37, %v2987_v36 }
  0x84   : > { %v543_v41 = vadd.f32 %v3020_v48, %v3017_v47 }
  0x85   : > { %v3179_v30 = vand.u32 127, %v658_v19 }
  0x87   : > { %v3182_v27 = vadd.s32 4294967288, %v3179_v30  ;;  %v3186_v40 = vadd.s32 4294967280, %v3179_v30 }
  0x88   : > { %490 = vmax.xlane.f32.xlu1 %v489_v17  ;;  %v3140_v17 = vld [vmem:[%s2880_s10 + $0x1b8] sm:$0xff] }
  0x89   : > { %499 = vadd.xlane.f32.xlu2 %v498_v24  ;;  %v483_v9 = vmax.f32 %v3137_v6, %v3140_v17  ;;  %v3155_v24 = vld [vmem:[%s2880_s10 + $0x1f0] sm:$0xff] }
  0x8a   : > { %487 = vmax.xlane.f32.xlu0 %v486_v25  ;;  %v519_v25 = vadd.f32 %v2978_v32, %v2975_v31  ;;  %v495_v22 = vmax.f32 %v3155_v24, %v3158_v2 }
  0x90   : > { %511 = vadd.xlane.f32.xlu1 %v510_v44  ;;  %v540_v44 = vadd.f32 %v2996_v39, %v2993_v38 }
  0x91   : > { %514 = vadd.xlane.f32.xlu2 %v513_v51  ;;  %v546_v51 = vadd.f32 %v3026_v50, %v3023_v49  ;;  %v552_v49 = vadd.f32 %v3050_v59, %v3047_v58  ;;  %v3204_v58 = vadd.s32 4294967272, %v3179_v30 }
  0x92   : > { %502 = vadd.xlane.f32.xlu0 %v501_v52 }
  0x98   : > { %493 = vmax.xlane.f32.xlu1 %v492_v0 }
  0x99   : > { %505 = vadd.xlane.f32.xlu2 %v504_v1  ;;  %v549_v1 = vadd.f32 %v3014_v46, %v3011_v45 }
  0x9a   : > { %484 = vmax.xlane.f32.xlu0 %v483_v9 }
  0xa0   : > { %523 = vadd.xlane.f32.xlu1 %v522_v10 }
  0xa1   : > { %526 = vadd.xlane.f32.xlu2 %v525_v13 }
  0xa2   : > { %517 = vadd.xlane.f32.xlu0 %v516_v14 }
  0xa8   : > { %508 = vadd.xlane.f32.xlu1 %v507_v4  ;;  %v561_v4 = vadd.f32 %v3044_v57, %v3041_v56 }
  0xa9   : > { %520 = vadd.xlane.f32.xlu2 %v519_v25 }
  0xaa   : > { %496 = vmax.xlane.f32.xlu0 %v495_v22 }
  0xb0   : > { %535 = vadd.xlane.f32.xlu1 %v534_v11  ;;  %v555_v11 = vadd.f32 %v3074_v16, %v3071_v15 }
  0xb1   : > { %538 = vadd.xlane.f32.xlu2 %v537_v12  ;;  %v558_v12 = vadd.f32 %v3038_v55, %v3035_v54  ;;  %v564_v54 = vadd.f32 %v3062_v3, %v3059_v63  ;;  %v573_v55 = vadd.f32 %v3098_v43, %v3095_v42  ;;  %v576_v3 = vadd.f32 %v3092_v35, %v3089_v34 }
  0xb2   : > { %529 = vadd.xlane.f32.xlu0 %v528_v18  ;;  %v567_v43 = vadd.f32 %v3086_v33, %v3083_v26  ;;  %v579_v26 = vadd.f32 %v3140_v17, %v3137_v6 }
  0xb3   : > { %v416_v20 = vpop.xlane.xlu1 %415 }
  0xb4   : > { %v410_v21 = vpop.xlane.xlu2 %409  ;;  %v673_v28 = vperm.slane %v416_v20, %v3179_v30 }
  0xb5   : > { %v404_v23 = vpop.xlane.xlu0 %403  ;;  %v666_v9 = vperm.slane %v410_v21, %v3186_v40 }
  0xb6   : > { %v660_v50 = vperm.slane %v404_v23, %v3179_v30 }
  0xb8   : > { %541 = vadd.xlane.f32.xlu1 %v540_v44  ;;  %v570_v44 = vadd.f32 %v3068_v8, %v3065_v7 }
  0xb9   : > { %547 = vadd.xlane.f32.xlu2 %v546_v51 }
  0xba   : > { %532 = vadd.xlane.f32.xlu0 %v531_v29 }
  0xbb   : > { %v419_v38 = vpop.xlane.xlu1 %418 }
  0xbc   : > { %v674_v39 = vperm.slane %v419_v38, %v3182_v27  ;;  %v422_v36 = vpop.xlane.xlu2 %421 }
  0xbd   : > { %v407_v37 = vpop.xlane.xlu0 %406  ;;  %v676_v52 = vperm.slane %v422_v36, %v3186_v40 }
  0xbe   : > { %v662_v0 = vperm.slane %v407_v37, %v3182_v27  ;;  %v675_v10 = vsel %vm663_vm0, %v674_v39, %v673_v28  ;;  %v582_v39 = vadd.f32 %v3116_v62, %v3113_v61  ;;  %v4430_v61 = vld [vmem:[#allocation16_spill] sm:$0xff] }
  0xbf   : > { %v677_v13 = vsel %vm667_vm1, %v676_v52, %v675_v10  ;;  %v585_v62 = vadd.f32 %v4430_v61, %v3107_v53  ;;  %v588_v52 = vadd.f32 %v3134_v5, %v3131_v60 }
  0xc0   : > { %v664_v47 = vsel %vm663_vm0, %v662_v0, %v660_v50  ;;  %544 = vadd.xlane.f32.xlu1 %v543_v41 }
  0xc1   : > { %v668_v48 = vsel %vm667_vm1, %v666_v9, %v664_v47  ;;  %553 = vadd.xlane.f32.xlu2 %v552_v49 }
  0xc2   : > { %550 = vadd.xlane.f32.xlu0 %v549_v1 }
  0xc3   : > { %v431_v59 = vpop.xlane.xlu1 %430 }
  0xc4   : > { %v681_v14 = vperm.slane %v431_v59, %v3182_v27  ;;  %v413_v45 = vpop.xlane.xlu2 %412 }
  0xc5   : > { %v428_v46 = vpop.xlane.xlu0 %427  ;;  %v670_v25 = vperm.slane %v413_v45, %v3204_v58  ;;  %v833_v45 = vld [vmem:[%s4431_s1 + $0x10] sm:$0xff] }
  0xc6   : > { %v680_v22 = vperm.slane %v428_v46, %v3179_v30 }
  0xc7   : > { %v672_v18 = vsel %vm671_vm2, %v670_v25, %v668_v48  ;;  %v831_v25 = vld [vmem:[%s4431_s1] sm:$0xff] }
  0xc8   : > { %v682_v20 = vsel %vm663_vm0, %v681_v14, %v680_v22  ;;  %562 = vadd.xlane.f32.xlu1 %v561_v4  ;;  %v834_v14 = vld [vmem:[%s4431_s1 + $0x18] sm:$0xff]  ;;  %v832_v4 = vld [vmem:[%s4431_s1 + $0x8] sm:$0xff]  ;;  %s2613_s1 = scalar_lea.hbm %s4352_s6, 16 }
  0xc9   : > { %556 = vadd.xlane.f32.xlu2 %v555_v11  ;;  %852 = vmatpush.msra.mxu0 %v834_v14  ;;  %p2615_p9 = scmp.lt.s32.totalorder %s2613_s1, %s2609_s15 }
  0xca   : > { %559 = vadd.xlane.f32.xlu0 %v558_v12 }
  0xcb   : > { %v434_v21 = vpop.xlane.xlu1 %433  ;;  %853 = vmatpush.msra.mxu0 %v833_v45  ;;  %p2616_p2 = por %p2615_p9, %p2614_p11 }
  0xcc   : > { %v683_v56 = vperm.slane %v434_v21, %v3186_v40  ;;  %v440_v57 = vpop.xlane.xlu2 %439 }
  0xcd   : > { %v425_v23 = vpop.xlane.xlu0 %424  ;;  %v687_v7 = vperm.slane %v440_v57, %v3179_v30  ;;  %854 = vmatpush.msra.mxu0 %v832_v4  ;;  %p2617_p10 = pnand %p2616_p2, %p2612_p8 }
  0xce   : > { %v678_v15 = vperm.slane %v425_v23, %v3204_v58  ;;  %v684_v16 = vsel %vm667_vm1, %v683_v56, %v682_v20 }
  0xcf   : > { %855 = vmatpush.msra.mxu0 %v831_v25 }
  0xd0   : > { %v679_v51 = vsel %vm671_vm2, %v678_v15, %v677_v13  ;;  %571 = vadd.xlane.f32.xlu1 %v570_v44  ;;  %v591_v13 = vadd.f32 %v3158_v2, %v3155_v24 }
  0xd1   : > { %v723_v29 = vsel %vm722_vm3, %v679_v51, %v672_v18  ;;  %574 = vadd.xlane.f32.xlu2 %v573_v55 }
  0xd2   : > { %565 = vadd.xlane.f32.xlu0 %v564_v54 }
  0xd3   : > { %v437_v8 = vpop.xlane.xlu1 %436 }
  0xd4   : > { %v685_v28 = vperm.slane %v437_v8, %v3204_v58  ;;  %v446_v38 = vpop.xlane.xlu2 %445 }
  0xd5   : > { %v443_v63 = vpop.xlane.xlu0 %442  ;;  %v690_v49 = vperm.slane %v446_v38, %v3186_v40 }
  0xd6   : > { %v688_v42 = vperm.slane %v443_v63, %v3182_v27  ;;  %v686_v36 = vsel %vm671_vm2, %v685_v28, %v684_v16 }
  0xd7   : > { %v725_v37 = vsel %vm724_vm4, %v686_v36, %v723_v29 }
  0xd8   : > { %v689_v41 = vsel %vm663_vm0, %v688_v42, %v687_v7  ;;  %577 = vadd.xlane.f32.xlu1 %v576_v3 }
  0xd9   : > { %583 = vadd.xlane.f32.xlu2 %v582_v39  ;;  %v691_v0 = vsel %vm667_vm1, %v690_v49, %v689_v41 }
  0xda   : > { %568 = vadd.xlane.f32.xlu0 %v567_v43 }
  0xdb   : > { %v3241_v34 = vpop.xlane.xlu1 %454 }
  0xdc   : > { %v449_v35 = vpop.xlane.xlu2 %448  ;;  %v695_v38 = vperm.slane %v3241_v34, %v3182_v27 }
  0xdd   : > { %v3243_v50 = vpop.xlane.xlu0 %451  ;;  %v692_v33 = vperm.slane %v449_v35, %v3204_v58 }
  0xde   : > { %v694_v63 = vperm.slane %v3243_v50, %v3179_v30 }
  0xdf   : > { %v693_v1 = vsel %vm671_vm2, %v692_v33, %v691_v0 }
  0xe0   : > { %v3255_v9 = vsel %vm726_vm5, %v693_v1, %v725_v37  ;;  %580 = vadd.xlane.f32.xlu1 %v579_v26  ;;  %v696_v26 = vsel %vm663_vm0, %v695_v38, %v694_v63 }
  0xe1   : > { %589 = vadd.xlane.f32.xlu2 %v588_v52 }
  0xe2   : > { %586 = vadd.xlane.f32.xlu0 %v585_v62 }
  0xe3   : > { %v464_v6 = vpop.xlane.xlu1 %463 }
  0xe4   : > { %v467_v17 = vpop.xlane.xlu2 %466  ;;  %v701_v3 = vperm.slane %v464_v6, %v3179_v30 }
  0xe5   : > { %v458_v10 = vpop.xlane.xlu0 %457  ;;  %v702_v42 = vperm.slane %v467_v17, %v3182_v27 }
  0xe6   : > { %v697_v39 = vperm.slane %v458_v10, %v3186_v40 }
  0xe7   : > { %v703_v33 = vsel %vm663_vm0, %v702_v42, %v701_v3 }
  0xe8   : > { %v698_v0 = vsel %vm667_vm1, %v697_v39, %v696_v26 }
  0xea   : > { %592 = vadd.xlane.f32.xlu0 %v591_v13 }
  0xeb   : > { %v3259_v53 = vpop.xlane.xlu1 %469 }
  0xec   : > { %v476_v60 = vpop.xlane.xlu2 %475  ;;  %v704_v50 = vperm.slane %v3259_v53, %v3186_v40 }
  0xed   : > { %v461_v5 = vpop.xlane.xlu0 %460  ;;  %v708_v36 = vperm.slane %v476_v60, %v3179_v30 }
  0xee   : > { %v699_v35 = vperm.slane %v461_v5, %v3204_v58  ;;  %v705_v60 = vsel %vm667_vm1, %v704_v50, %v703_v33 }
  0xf0   : > { %v700_v17 = vsel %vm671_vm2, %v699_v35, %v698_v0 }
  0xf1   : > { %v729_v14 = vsel %vm728_vm6, %v700_v17, %v3255_v9 }
  0xf3   : > { %v3261_v47 = vpop.xlane.xlu1 %472 }
  0xf4   : > { %v3263_v48 = vpop.xlane.xlu2 %481  ;;  %v706_v61 = vperm.slane %v3261_v47, %v3204_v58 }
  0xf5   : > { %v479_v59 = vpop.xlane.xlu0 %478  ;;  %v711_v62 = vperm.slane %v3263_v48, %v3186_v40 }
  0xf6   : > { %v709_v37 = vperm.slane %v479_v59, %v3182_v27  ;;  %v707_v47 = vsel %vm671_vm2, %v706_v61, %v705_v60 }
  0xf8   : > { %v710_v1 = vsel %vm663_vm0, %v709_v37, %v708_v36 }
  0xf9   : > { %v712_v48 = vsel %vm667_vm1, %v711_v62, %v710_v1 }
  0xfb   : > { %v3271_v24 = vpop.xlane.xlu1 %490 }
  0xfc   : > { %v500_v2 = vpop.xlane.xlu2 %499  ;;  %v716_v10 = vperm.slane %v3271_v24, %v3182_v27 }
  0xfd   : > { %v3273_v46 = vpop.xlane.xlu0 %487  ;;  %v594_v22 = vmul.f32 0.00390625, %v500_v2 }
  0xfe   : > { %v715_v13 = vperm.slane %v3273_v46, %v3179_v30 }
  0xff   : > { %v768_v21 = vperm.slane %v594_v22, %v3179_v30 }
 0x100   : > { %v717_v4 = vsel %vm663_vm0, %v716_v10, %v715_v13 }
 0x103   : > { %v512_v11 = vpop.xlane.xlu1 %511 }
 0x104   : > { %v598_v12 = vmul.f32 0.00390625, %v512_v11  ;;  %v515_v18 = vpop.xlane.xlu2 %514 }
 0x105   : > { %v503_v20 = vpop.xlane.xlu0 %502  ;;  %v599_v56 = vmul.f32 0.00390625, %v515_v18  ;;  %v731_v18 = vsel %vm730_vm7, %v707_v47, %v729_v14 }
 0x106   : > { %v595_v57 = vmul.f32 0.00390625, %v503_v20  ;;  %v775_v23 = vperm.slane %v598_v12, %v3179_v30 }
 0x107   : > { %v776_v44 = vperm.slane %v599_v56, %v3182_v27 }
 0x108   : > { %v769_v15 = vperm.slane %v595_v57, %v3182_v27 }
 0x109   : > { %v777_v54 = vsel %vm663_vm0, %v776_v44, %v775_v23 }
 0x10a   : > { %v770_v55 = vsel %vm663_vm0, %v769_v15, %v768_v21 }
 0x10b   : > { %v494_v16 = vpop.xlane.xlu1 %493 }
 0x10c   : > { %v506_v51 = vpop.xlane.xlu2 %505  ;;  %v718_v5 = vperm.slane %v494_v16, %v3186_v40 }
 0x10d   : > { %v485_v29 = vpop.xlane.xlu0 %484  ;;  %v596_v7 = vmul.f32 0.00390625, %v506_v51 }
 0x10e   : > { %v713_v6 = vperm.slane %v485_v29, %v3204_v58  ;;  %v719_v11 = vsel %vm667_vm1, %v718_v5, %v717_v4 }
 0x10f   : > { %v771_v8 = vperm.slane %v596_v7, %v3186_v40 }
 0x110   : > { %v714_v45 = vsel %vm671_vm2, %v713_v6, %v712_v48 }
 0x111   : > { %v772_v28 = vsel %vm667_vm1, %v771_v8, %v770_v55  ;;  %v733_v21 = vsel %vm732_vm8, %v714_v45, %v731_v18 }
 0x113   : > { %v3295_v43 = vpop.xlane.xlu1 %523 }
 0x114   : > { %v527_v41 = vpop.xlane.xlu2 %526  ;;  %v602_v37 = vmul.f32 0.00390625, %v3295_v43 }
 0x115   : > { %v518_v49 = vpop.xlane.xlu0 %517 }
 0x116   : > { %v600_v34 = vmul.f32 0.00390625, %v518_v49  ;;  %v603_v49 = vmul.f32 0.00390625, %v527_v41  ;;  %v782_v33 = vperm.slane %v602_v37, %v3179_v30 }
 0x118   : > { %v778_v52 = vperm.slane %v600_v34, %v3186_v40  ;;  %v783_v61 = vperm.slane %v603_v49, %v3182_v27 }
 0x11a   : > { %v779_v53 = vsel %vm667_vm1, %v778_v52, %v777_v54  ;;  %v784_v43 = vsel %vm663_vm0, %v783_v61, %v782_v33 }
 0x11b   : > { %v509_v59 = vpop.xlane.xlu1 %508 }
 0x11c   : > { %v597_v24 = vmul.f32 0.00390625, %v509_v59  ;;  %v521_v2 = vpop.xlane.xlu2 %520 }
 0x11d   : > { %v497_v46 = vpop.xlane.xlu0 %496  ;;  %v601_v25 = vmul.f32 0.00390625, %v521_v2 }
 0x11e   : > { %v720_v22 = vperm.slane %v497_v46, %v3204_v58  ;;  %v773_v12 = vperm.slane %v597_v24, %v3204_v58 }
 0x11f   : > { %v780_v9 = vperm.slane %v601_v25, %v3204_v58 }
 0x120   : > { %v721_v20 = vsel %vm671_vm2, %v720_v22, %v719_v11  ;;  %v774_v56 = vsel %vm671_vm2, %v773_v12, %v772_v28 }
 0x121   : > { %v735_v57 = vsel %vm734_vm9, %v721_v20, %v733_v21  ;;  %v781_v23 = vsel %vm671_vm2, %v780_v9, %v779_v53 }
 0x122   : > { %2294 = vmatmul.msk.f32.vlgmr.msra.gmra.mxu0 %vm835_vm10, %v735_v57  ;;  %v3339_v44 = vsel %vm722_vm3, %v781_v23, %v774_v56 }
 0x123   : > { %v536_v15 = vpop.xlane.xlu1 %535 }
 0x124   : > { %v539_v54 = vpop.xlane.xlu2 %538  ;;  %v606_v35 = vmul.f32 0.00390625, %v536_v15 }
 0x125   : > { %v530_v55 = vpop.xlane.xlu0 %529  ;;  %v607_v34 = vmul.f32 0.00390625, %v539_v54 }
 0x126   : > { %v604_v26 = vmul.f32 0.00390625, %v530_v55  ;;  %v789_v0 = vperm.slane %v606_v35, %v3179_v30 }
 0x127   : > { %v790_v1 = vperm.slane %v607_v34, %v3182_v27 }
 0x128   : > { %v785_v6 = vperm.slane %v604_v26, %v3186_v40 }
 0x129   : > { %v791_v53 = vsel %vm663_vm0, %v790_v1, %v789_v0 }
 0x12a   : > { %v786_v60 = vsel %vm667_vm1, %v785_v6, %v784_v43 }
 0x12b   : > { %v542_v16 = vpop.xlane.xlu1 %541 }
 0x12c   : > { %v548_v51 = vpop.xlane.xlu2 %547  ;;  %v608_v17 = vmul.f32 0.00390625, %v542_v16 }
 0x12d   : > { %v533_v29 = vpop.xlane.xlu0 %532  ;;  %v610_v41 = vmul.f32 0.00390625, %v548_v51 }
 0x12e   : > { %v605_v10 = vmul.f32 0.00390625, %v533_v29  ;;  %v792_v5 = vperm.slane %v608_v17, %v3186_v40 }
 0x12f   : > { %v796_v4 = vperm.slane %v610_v41, %v3179_v30 }
 0x130   : > { %v787_v47 = vperm.slane %v605_v10, %v3204_v58 }
 0x132   : > { %v788_v57 = vsel %vm671_vm2, %v787_v47, %v786_v60  ;;  %v865_v60 = vld [vmem:[%s4348_s2] sm:$0xff] }
 0x133   : > { %v545_v7 = vpop.xlane.xlu1 %544  ;;  %888 = vmatpush.msra.mxu1 %v865_v60 }
 0x134   : > { %v554_v8 = vpop.xlane.xlu2 %553  ;;  %v609_v14 = vmul.f32 0.00390625, %v545_v7 }
 0x135   : > { %v551_v38 = vpop.xlane.xlu0 %550  ;;  %v612_v45 = vmul.f32 0.00390625, %v554_v8 }
 0x136   : > { %v611_v13 = vmul.f32 0.00390625, %v551_v38  ;;  %v794_v55 = vperm.slane %v609_v14, %v3204_v58 }
 0x137   : > { %v799_v16 = vperm.slane %v612_v45, %v3186_v40 }
 0x138   : > { %v797_v25 = vperm.slane %v611_v13, %v3182_v27 }
 0x13a   : > { %v798_v7 = vsel %vm663_vm0, %v797_v25, %v796_v4 }
 0x13b   : > { %v563_v63 = vpop.xlane.xlu1 %562  ;;  %v800_v34 = vsel %vm667_vm1, %v799_v16, %v798_v7 }
 0x13c   : > { %v557_v28 = vpop.xlane.xlu2 %556  ;;  %v615_v24 = vmul.f32 0.00390625, %v563_v63 }
 0x13d   : > { %v560_v3 = vpop.xlane.xlu0 %559  ;;  %v613_v22 = vmul.f32 0.00390625, %v557_v28 }
 0x13e   : > { %v614_v2 = vmul.f32 0.00390625, %v560_v3  ;;  %v804_v51 = vperm.slane %v615_v24, %v3182_v27 }
 0x13f   : > { %v801_v8 = vperm.slane %v613_v22, %v3204_v58 }
 0x140   : > { %v803_v29 = vperm.slane %v614_v2, %v3179_v30 }
 0x141   : > { %v802_v33 = vsel %vm671_vm2, %v801_v8, %v800_v34 }
 0x142   : > { %v805_v26 = vsel %vm663_vm0, %v804_v51, %v803_v29 }
 0x143   : > { %v572_v42 = vpop.xlane.xlu1 %571 }
 0x144   : > { %v575_v36 = vpop.xlane.xlu2 %574  ;;  %v618_v48 = vmul.f32 0.00390625, %v572_v42 }
 0x145   : > { %v566_v39 = vpop.xlane.xlu0 %565  ;;  %v619_v59 = vmul.f32 0.00390625, %v575_v36  ;;  %v793_v36 = vsel %vm667_vm1, %v792_v5, %v791_v53 }
 0x146   : > { %v616_v11 = vmul.f32 0.00390625, %v566_v39  ;;  %v810_v23 = vperm.slane %v618_v48, %v3179_v30  ;;  %v795_v35 = vsel %vm671_vm2, %v794_v55, %v793_v36 }
 0x147   : > { %v811_v15 = vperm.slane %v619_v59, %v3182_v27  ;;  %v903_v59 = vshrl.u32 %v658_v19, 7 }
 0x148   : > { %v806_v38 = vperm.slane %v616_v11, %v3186_v40 }
 0x149   : > { %v812_v37 = vsel %vm663_vm0, %v811_v15, %v810_v23  ;;  %2387 = vset.pattern.permute.xlu0 %v903_v59  ;;  %2385 = vset.pattern.permute.xlu1 %v903_v59  ;;  %v3396_v14 = vadd.s32 8, %v903_v59 }
 0x14b   : > { %v578_v50 = vpop.xlane.xlu1 %577  ;;  %2386 = vset.pattern.permute.xlu2 %v3396_v14 }
 0x14c   : > { %v584_v52 = vpop.xlane.xlu2 %583  ;;  %v620_v18 = vmul.f32 0.00390625, %v578_v50  ;;  %v825_v50 = vsel %vm724_vm4, %v788_v57, %v3339_v44 }
 0x14d   : > { %v569_v62 = vpop.xlane.xlu0 %568  ;;  %v622_v20 = vmul.f32 0.00390625, %v584_v52  ;;  %v826_v6 = vsel %vm726_vm5, %v795_v35, %v825_v50  ;;  %v2419_v35 = vld [vmem:[%s2880_s10 + $0x50] sm:$0xff] }
 0x14e   : > { %v617_v9 = vmul.f32 0.00390625, %v569_v62  ;;  %v813_v28 = vperm.slane %v620_v18, %v3186_v40  ;;  %v827_v10 = vsel %vm728_vm6, %v802_v33, %v826_v6  ;;  %v916_v18 = vadd.s32 16, %v903_v59  ;;  %v2421_v33 = vld [vmem:[%s2880_s10 + $0x60] sm:$0xff] }
 0x14f   : > { %v817_v42 = vperm.slane %v622_v20, %v3179_v30  ;;  %v807_v30 = vsel %vm667_vm1, %v806_v38, %v805_v26  ;;  %v922_v20 = vadd.s32 24, %v903_v59  ;;  %v2420_v26 = vld [vmem:[%s2880_s10 + $0x58] sm:$0xff] }
 0x150   : > { %v808_v3 = vperm.slane %v617_v9, %v3204_v58  ;;  %v814_v62 = vsel %vm667_vm1, %v813_v28, %v812_v37 }
 0x152   : > { %v809_v52 = vsel %vm671_vm2, %v808_v3, %v807_v30  ;;  %v2417_v3 = vld [vmem:[%s2880_s10 + $0x40] sm:$0xff] }
 0x153   : > { %v581_v46 = vpop.xlane.xlu1 %580 }
 0x154   : > { %v590_v56 = vpop.xlane.xlu2 %589  ;;  %v621_v54 = vmul.f32 0.00390625, %v581_v46 }
 0x155   : > { %v587_v12 = vpop.xlane.xlu0 %586  ;;  %v624_v63 = vmul.f32 0.00390625, %v590_v56 }
 0x156   : > { %v623_v21 = vmul.f32 0.00390625, %v587_v12  ;;  %v815_v49 = vperm.slane %v621_v54, %v3204_v58 }
 0x158   : > { %v818_v39 = vperm.slane %v623_v21, %v3182_v27  ;;  %v820_v27 = vperm.slane %v624_v63, %v3186_v40  ;;  %v816_v17 = vsel %vm671_vm2, %v815_v49, %v814_v62  ;;  %v828_v40 = vsel %vm730_vm7, %v809_v52, %v827_v10 }
 0x159   : > { %v829_v13 = vsel %vm732_vm8, %v816_v17, %v828_v40 }
 0x15a   : > { %v819_v0 = vsel %vm663_vm0, %v818_v39, %v817_v42  ;;  %v2418_v39 = vld [vmem:[%s2880_s10 + $0x48] sm:$0xff] }
 0x15b   : > { %v821_v43 = vsel %vm667_vm1, %v820_v27, %v819_v0  ;;  %v2422_v27 = vld [vmem:[%s2880_s10 + $0x68] sm:$0xff] }
 0x15d   : > { %v593_v61 = vpop.xlane.xlu0 %592 }
 0x15e   : > { %v625_v1 = vmul.f32 0.00390625, %v593_v61 }
 0x160   : > { %v822_v44 = vperm.slane %v625_v1, %v3204_v58 }
 0x162   : > { %v823_v41 = vsel %vm671_vm2, %v822_v44, %v821_v43 }
 0x163   : > { %v830_v53 = vsel %vm734_vm9, %v823_v41, %v829_v13 }
 0x164   : > { %2295 = vmatmul.msk.f32.gmra.mxu0 %vm835_vm10, %v830_v53 }
 0x19f   : > { %v857_v58 = vpop.f32.mrf.mxu0 }
 0x1a0   : > { %v863_v5 = vmax.f32 %v857_v58, 0.0 }
 0x1a2   : > { %2296 = vmatmul.msk.f32.vlgmr.msra.gmra.mxu1 %vm866_vm11, %v863_v5 }
 0x1e1   : > { %v860_v47 = vpop.f32.mrf.mxu0 }
 0x1e2   : > { %v864_v48 = vmax.f32 %v860_v47, 0.0 }
 0x1e4   : > { %2297 = vmatmul.msk.f32.gmra.mxu1 %vm866_vm11, %v864_v48 }
 0x21f   : > { %v890_v45 = vpop.f32.mrf.mxu1 }
 0x261   : > { %v893_v24 = vpop.f32.mrf.mxu1 }
 0x262   : > { %v896_v2 = vadd.f32 %v893_v24, %v890_v45  ;;  %v2424_v45 = vld [vmem:[%s2880_s10 + $0x8] sm:$0xff] }
 0x264   : > { %v897_v46 = vmul.f32 0.5, %v896_v2 }
 0x266   : > { %2411 = vtanh.f32 %v897_v46  ;;  %v1563_v46 = vld [vmem:[#allocation6 + $0xf0] sm:$0xff] }
 0x267   : > { %1663 = vmatpush.msra.mxu2 %v1563_v46  ;;  %v2435_v46 = vld [vmem:[%s2880_s10 + $0x30] sm:$0xff] }
 0x26c   : > { %v2412_v4 = vpop.eup %2411 }
 0x26d   : > { %v899_v25 = vmul.f32 0.5, %v2412_v4  ;;  %v1595_v4 = vld [vmem:[#allocation6 + $0x1f0] sm:$0xff] }
 0x26e   : > { %1683 = vmatpush.msra.mxu3 %v1595_v4 }
 0x26f   : > { %v900_v22 = vadd.f32 0.5, %v899_v25  ;;  %v1561_v25 = vld [vmem:[#allocation6 + $0xe0] sm:$0xff] }
 0x270   : > { %1664 = vmatpush.msra.mxu2 %v1561_v25  ;;  %v2436_v25 = vld [vmem:[%s2880_s10 + $0x38] sm:$0xff] }
 0x271   : > { %v926_v11 = vperm.slane %v900_v22, 1  ;;  %v901_v12 = vperm.slane %v900_v22, 0  ;;  %2075 = vst.msk [vmem:[%s3400_s18] sm:$0xff] %vm835_vm10, %v900_v22  ;;  %v951_v19 = vperm.slane %v900_v22, 2  ;;  %v976_v9 = vperm.slane %v900_v22, 3 }
 0x272   : > { %v1001_v21 = vperm.slane %v900_v22, 4  ;;  %v1076_v56 = vperm.slane %v900_v22, 7  ;;  %v1026_v57 = vperm.slane %v900_v22, 5  ;;  %v1051_v23 = vperm.slane %v900_v22, 6  ;;  %v2425_v22 = vld [vmem:[%s2880_s10 + $0x10] sm:$0xff] }
 0x273   : > { %931 = vperm.xlu0 %2387, %v926_v11   ;;  %912 = vperm.xlu2 %2386, %v901_v12  }
 0x274   : > { %906 = vperm.xlu1 %2385, %v901_v12  }
 0x27b   : > { %2391 = vset.pattern.permute.xlu0 %v3396_v14  ;;  %937 = vperm.xlu2 %2386, %v926_v11  }
 0x27c   : > { %956 = vperm.xlu1 %2385, %v951_v19  }
 0x283   : > { %987 = vperm.xlu0 %2391, %v976_v9   ;;  %962 = vperm.xlu2 %2386, %v951_v19  }
 0x284   : > { %2388 = vset.pattern.permute.xlu1 %v916_v18 }
 0x28b   : > { %2394 = vset.pattern.permute.xlu0 %v922_v20  ;;  %2389 = vset.pattern.permute.xlu2 %v916_v18 }
 0x28c   : > { %918 = vperm.xlu1 %2388, %v901_v12  }
 0x293   : > { %949 = vperm.xlu0 %2394, %v926_v11   ;;  %943 = vperm.xlu2 %2389, %v926_v11  }
 0x294   : > { %2390 = vset.pattern.permute.xlu1 %v903_v59 }
 0x29b   : > { %2399 = vset.pattern.permute.xlu0 %v916_v18  ;;  %968 = vperm.xlu2 %2389, %v951_v19  }
 0x29c   : > { %981 = vperm.xlu1 %2390, %v976_v9  }
 0x2a3   : > { %1018 = vperm.xlu0 %2399, %v1001_v21   ;;  %2392 = vset.pattern.permute.xlu2 %v3396_v14 }
 0x2a4   : > { %1006 = vperm.xlu1 %2390, %v1001_v21  }
 0x2ab   : > { %2404 = vset.pattern.permute.xlu0 %v903_v59  ;;  %1012 = vperm.xlu2 %2392, %v1001_v21  }
 0x2ac   : > { %2393 = vset.pattern.permute.xlu1 %v922_v20 }
 0x2b3   : > { %1081 = vperm.xlu0 %2404, %v1076_v56   ;;  %2395 = vset.pattern.permute.xlu2 %v916_v18 }
 0x2b4   : > { %924 = vperm.xlu1 %2393, %v901_v12  }
 0x2bb   : > { %2408 = vset.pattern.permute.xlu0 %v916_v18  ;;  %993 = vperm.xlu2 %2395, %v976_v9  }
 0x2bc   : > { %2396 = vset.pattern.permute.xlu1 %v903_v59 }
 0x2c3   : > { %1093 = vperm.xlu0 %2408, %v1076_v56   ;;  %2397 = vset.pattern.permute.xlu2 %v3396_v14 }
 0x2c4   : > { %1031 = vperm.xlu1 %2396, %v1026_v57  }
 0x2cb   : > { %1037 = vperm.xlu2 %2397, %v1026_v57   ;;  %2410 = vset.pattern.permute.xlu0 %v922_v20 }
 0x2cc   : > { %2398 = vset.pattern.permute.xlu1 %v922_v20 }
 0x2cd   : > { %v3409_v15 = vpop.permute.xlu2 %912 }
 0x2ce   : > { %v3477_v11 = vmul.f32 %v2425_v22, %v3409_v15 }
 0x2d3   : > { %2400 = vset.pattern.permute.xlu2 %v903_v59  ;;  %v2423_v59 = vld [vmem:[%s2880_s10] sm:$0xff] }
 0x2d4   : > { %974 = vperm.xlu1 %2398, %v951_v19  }
 0x2d5   : > { %v938_v54 = vpop.permute.xlu2 %937 }
 0x2d6   : > { %v3432_v34 = vmul.f32 %v2419_v35, %v938_v54  ;;  %v3435_v50 = vmul.f32 %v2420_v26, %v938_v54  ;;  %v2429_v26 = vld [vmem:[%s2880_s10 + $0x88] sm:$0xff] }
 0x2d8   : > { %4434 = vst [vmem:[#allocation18_spill] sm:$0xff] %v3432_v34 }
 0x2d9   : > { %4435 = vst [vmem:[#allocation19_spill] sm:$0xff] %v3435_v50 }
 0x2db   : > { %1056 = vperm.xlu2 %2400, %v1051_v23  }
 0x2dc   : > { %2401 = vset.pattern.permute.xlu1 %v3396_v14 }
 0x2dd   : > { %v3411_v16 = vpop.permute.xlu2 %962 }
 0x2e3   : > { %2402 = vset.pattern.permute.xlu2 %v922_v20 }
 0x2e4   : > { %1062 = vperm.xlu1 %2401, %v1051_v23  }
 0x2e5   : > { %v932_v7 = vpop.permute.xlu0 %931 }
 0x2e6   : > { %v907_v55 = vpop.permute.xlu1 %906  ;;  %v3424_v42 = vmul.f32 %v2417_v3, %v932_v7  ;;  %v3427_v36 = vmul.f32 %v2418_v39, %v932_v7  ;;  %v1625_v7 = vld [vmem:[#allocation6 + $0x2e0] sm:$0xff]  ;;  %v2427_v3 = vld [vmem:[%s2880_s10 + $0x90] sm:$0xff] }
 0x2e7   : > { %v3473_v24 = vmul.f32 %v2424_v45, %v907_v55  ;;  %v3487_v39 = vmul.f32 %v2427_v3, %v3411_v16 }
 0x2e8   : > { %4432 = vst [vmem:[#allocation16_spill] sm:$0xff] %v3424_v42  ;;  %v1183_v62 = vmax.f32 %v3424_v42, %v3432_v34  ;;  %v1192_v52 = vmax.f32 %v3427_v36, %v3435_v50  ;;  %v1327_v6 = vadd.f32 %v3432_v34, %v3424_v42  ;;  %v1336_v17 = vadd.f32 %v3435_v50, %v3427_v36  ;;  %v2451_v50 = vld [vmem:[%s2880_s10 + $0x128] sm:$0xff]  ;;  %v2466_v42 = vld [vmem:[%s2880_s10 + $0x198] sm:$0xff] }
 0x2e9   : > { %4433 = vst [vmem:[#allocation17_spill] sm:$0xff] %v3427_v36 }
 0x2ea   : > { %4440 = vst [vmem:[#allocation24_spill] sm:$0xff] %v3487_v39 }
 0x2eb   : > { %999 = vperm.xlu2 %2402, %v976_v9   ;;  %v1593_v9 = vld [vmem:[#allocation6 + $0x1e0] sm:$0xff] }
 0x2ec   : > { %2403 = vset.pattern.permute.xlu1 %v916_v18  ;;  %1684 = vmatpush.msra.mxu3 %v1593_v9 }
 0x2ed   : > { %v944_v29 = vpop.permute.xlu2 %943 }
 0x2ee   : > { %v3413_v51 = vpop.permute.xlu1 %956  ;;  %v3438_v30 = vmul.f32 %v2421_v33, %v944_v29  ;;  %v3441_v61 = vmul.f32 %v2422_v27, %v944_v29  ;;  %v1591_v29 = vld [vmem:[#allocation6 + $0x1d0] sm:$0xff]  ;;  %v1657_v33 = vld [vmem:[#allocation6 + $0x3e0] sm:$0xff]  ;;  %v2430_v27 = vld [vmem:[%s2880_s10 + $0x98] sm:$0xff] }
 0x2ef   : > { %1685 = vmatpush.msra.mxu3 %v1591_v29 }
 0x2f0   : > { %4436 = vst [vmem:[#allocation20_spill] sm:$0xff] %v3438_v30  ;;  %v1184_v44 = vmax.f32 %v1183_v62, %v3438_v30  ;;  %v1193_v10 = vmax.f32 %v1192_v52, %v3441_v61  ;;  %v1328_v43 = vadd.f32 %v1327_v6, %v3438_v30  ;;  %v3499_v62 = vmul.f32 %v2430_v27, %v3411_v16  ;;  %v2431_v16 = vld [vmem:[%s2880_s10 + $0x20] sm:$0xff] }
 0x2f1   : > { %4437 = vst [vmem:[#allocation21_spill] sm:$0xff] %v3441_v61 }
 0x2f2   : > { %4443 = vst [vmem:[#allocation27_spill] sm:$0xff] %v3499_v62 }
 0x2f3   : > { %2405 = vset.pattern.permute.xlu2 %v3396_v14  ;;  %v3470_v14 = vmul.f32 %v2423_v59, %v907_v55  ;;  %v1559_v55 = vld [vmem:[#allocation6 + $0xd0] sm:$0xff]  ;;  %v2434_v59 = vld [vmem:[%s2880_s10 + $0xa8] sm:$0xff] }
 0x2f4   : > { %1043 = vperm.xlu1 %2403, %v1026_v57   ;;  %1665 = vmatpush.msra.mxu2 %v1559_v55 }
 0x2f5   : > { %v3417_v38 = vpop.permute.xlu2 %968  ;;  %v3419_v63 = vpop.permute.xlu0 %987  ;;  %v1165_v52 = vmax.f32 %v3470_v14, %v3477_v11 }
 0x2f6   : > { %v3531_v45 = vmul.f32 %v2434_v59, %v3417_v38 }
 0x2f8   : > { %4445 = vst [vmem:[#allocation29_spill] sm:$0xff] %v3531_v45 }
 0x2fb   : > { %1087 = vperm.xlu2 %2405, %v1076_v56  }
 0x2fc   : > { %2406 = vset.pattern.permute.xlu1 %v922_v20 }
 0x2fe   : > { %v3415_v8 = vpop.permute.xlu1 %918 }
 0x303   : > { %2407 = vset.pattern.permute.xlu2 %v916_v18 }
 0x304   : > { %1024 = vperm.xlu1 %2406, %v1001_v21   ;;  %v1659_v21 = vld [vmem:[#allocation6 + $0x3f0] sm:$0xff] }
 0x305   : > { %v3429_v37 = vpop.permute.xlu2 %1012  ;;  %v950_v49 = vpop.permute.xlu0 %949  ;;  %1723 = vmatpush.msrb.mxu0 %v1659_v21 }
 0x306   : > { %v3448_v0 = vmul.f32 %v950_v49, %v2975_v31  ;;  %v3451_v1 = vmul.f32 %v950_v49, %v2978_v32  ;;  %v1337_v31 = vadd.f32 %v1336_v17, %v3441_v61  ;;  %v2428_v49 = vld [vmem:[%s2880_s10 + $0x80] sm:$0xff] }
 0x307   : > { %v3491_v35 = vmul.f32 %v2428_v49, %v3413_v51  ;;  %1724 = vmatpush.msrb.mxu0 %v1657_v33 }
 0x308   : > { %4438 = vst [vmem:[#allocation22_spill] sm:$0xff] %v3448_v0  ;;  %v1185_v32 = vmax.f32 %v1184_v44, %v3448_v0  ;;  %v1194_v41 = vmax.f32 %v1193_v10, %v3451_v1  ;;  %v1329_v53 = vadd.f32 %v1328_v43, %v3448_v0  ;;  %v1338_v60 = vadd.f32 %v1337_v31, %v3451_v1  ;;  %v2432_v31 = vld [vmem:[%s2880_s10 + $0x28] sm:$0xff] }
 0x309   : > { %4439 = vst [vmem:[#allocation23_spill] sm:$0xff] %v3451_v1  ;;  %v3511_v43 = vmul.f32 %v2431_v16, %v3415_v8  ;;  %v2439_v16 = vld [vmem:[%s2880_s10 + $0xc0] sm:$0xff] }
 0x30a   : > { %v1186_v58 = vrot.slane %v1185_v32, 4  ;;  %v1195_v5 = vrot.slane %v1194_v41, 4  ;;  %v1330_v47 = vrot.slane %v1329_v53, 4  ;;  %v1339_v48 = vrot.slane %v1338_v60, 4  ;;  %4441 = vst [vmem:[#allocation25_spill] sm:$0xff] %v3491_v35 }
 0x30b   : > { %1068 = vperm.xlu2 %2407, %v1051_v23   ;;  %v1166_v3 = vmax.f32 %v1165_v52, %v3511_v43 }
 0x30c   : > { %1049 = vperm.xlu1 %2406, %v1026_v57   ;;  %v1187_v12 = vmax.f32 %v1185_v32, %v1186_v58  ;;  %v1196_v19 = vmax.f32 %v1194_v41, %v1195_v5  ;;  %v1340_v54 = vadd.f32 %v1339_v48, %v1338_v60  ;;  %v3515_v32 = vmul.f32 %v2432_v31, %v3415_v8  ;;  %v2433_v48 = vld [vmem:[%s2880_s10 + $0xa0] sm:$0xff] }
 0x30d   : > { %v1201_v60 = vmax.f32 %v3491_v35, %v3487_v39  ;;  %v1345_v5 = vadd.f32 %v3487_v39, %v3491_v35  ;;  %v3527_v8 = vmul.f32 %v2433_v48, %v3417_v38  ;;  %v2442_v48 = vld [vmem:[%s2880_s10 + $0x118] sm:$0xff]  ;;  %v2443_v39 = vld [vmem:[%s2880_s10 + $0xe0] sm:$0xff] }
 0x30e   : > { %v3421_v28 = vpop.permute.xlu1 %981  ;;  %v1188_v44 = vrot.slane %v1187_v12, 2  ;;  %v1197_v10 = vrot.slane %v1196_v19, 2  ;;  %v3585_v59 = vmul.f32 %v2442_v48, %v3429_v37 }
 0x30f   : > { %4444 = vst [vmem:[#allocation28_spill] sm:$0xff] %v3527_v8  ;;  %v3557_v31 = vmul.f32 %v2439_v16, %v3421_v28  ;;  %v1655_v16 = vld [vmem:[#allocation6 + $0x3d0] sm:$0xff] }
 0x310   : > { %v1189_v38 = vmax.f32 %v1187_v12, %v1188_v44  ;;  %v1198_v29 = vmax.f32 %v1196_v19, %v1197_v10  ;;  %v3564_v19 = vmax.f32 %v1201_v60, %v3527_v8  ;;  %v3574_v10 = vadd.f32 %v1345_v5, %v3527_v8  ;;  %v2441_v60 = vld [vmem:[%s2880_s10 + $0x110] sm:$0xff]  ;;  %4451 = vst [vmem:[#allocation35_spill] sm:$0xff] %v3585_v59  ;;  %v1621_v8 = vld [vmem:[#allocation6 + $0x2c0] sm:$0xff] }
 0x311   : > { %4448 = vst [vmem:[#allocation32_spill] sm:$0xff] %v3557_v31  ;;  %1725 = vmatpush.msrb.mxu0 %v1655_v16  ;;  %v1619_v16 = vld [vmem:[#allocation6 + $0x2b0] sm:$0xff] }
 0x313   : > { %2409 = vset.pattern.permute.xlu2 %v922_v20  ;;  %v1627_v20 = vld [vmem:[#allocation6 + $0x2f0] sm:$0xff] }
 0x314   : > { %1099 = vperm.xlu1 %2406, %v1076_v56   ;;  %v2426_v56 = vld [vmem:[%s2880_s10 + $0x18] sm:$0xff]  ;;  %1703 = vmatpush.msrb.mxu1 %v1627_v20  ;;  %v2437_v20 = vld [vmem:[%s2880_s10 + $0xd0] sm:$0xff] }
 0x315   : > { %v3465_v13 = vpop.permute.xlu2 %993  ;;  %v3483_v57 = vmul.f32 %v2426_v56, %v3409_v15  ;;  %v3495_v15 = vmul.f32 %v2429_v26, %v3413_v51  ;;  %v1309_v51 = vadd.f32 %v3477_v11, %v3470_v14  ;;  %v3543_v21 = vmul.f32 %v2437_v20, %v3419_v63  ;;  %v2438_v56 = vld [vmem:[%s2880_s10 + $0xd8] sm:$0xff]  ;;  %v1589_v20 = vld [vmem:[#allocation6 + $0x1c0] sm:$0xff] }
 0x316   : > { %v3461_v40 = vpop.permute.xlu1 %1006  ;;  %1704 = vmatpush.msrb.mxu1 %v1625_v7  ;;  %v3547_v55 = vmul.f32 %v2438_v56, %v3419_v63  ;;  %v2440_v63 = vld [vmem:[%s2880_s10 + $0xc8] sm:$0xff]  ;;  %1686 = vmatpush.msra.mxu3 %v1589_v20 }
 0x317   : > { %4442 = vst [vmem:[#allocation26_spill] sm:$0xff] %v3495_v15  ;;  %v1174_v6 = vmax.f32 %v3473_v24, %v3483_v57  ;;  %v1318_v17 = vadd.f32 %v3483_v57, %v3473_v24  ;;  %v1210_v58 = vmax.f32 %v3495_v15, %v3499_v62  ;;  %v1310_v33 = vadd.f32 %v1309_v51, %v3511_v43  ;;  %v2445_v20 = vld [vmem:[%s2880_s10 + $0xe8] sm:$0xff] }
 0x318   : > { %4446 = vst [vmem:[#allocation30_spill] sm:$0xff] %v3543_v21  ;;  %v3561_v12 = vmul.f32 %v2440_v63, %v3421_v28  ;;  %v1199_v51 = vrot.slane %v1198_v29, 1  ;;  %v1363_v56 = vadd.f32 %v3543_v21, %v3557_v31  ;;  %v1555_v63 = vld [vmem:[#allocation6 + $0xb0] sm:$0xff] }
 0x319   : > { %4447 = vst [vmem:[#allocation31_spill] sm:$0xff] %v3547_v55  ;;  %v1319_v27 = vadd.f32 %v1318_v17, %v3515_v32 }
 0x31a   : > { %4449 = vst [vmem:[#allocation33_spill] sm:$0xff] %v3561_v12  ;;  %v3597_v5 = vmax.f32 %v1198_v29, %v1199_v51  ;;  %v1653_v29 = vld [vmem:[#allocation6 + $0x3c0] sm:$0xff] }
 0x31b   : > { %1074 = vperm.xlu2 %2409, %v1051_v23   ;;  %v1331_v23 = vadd.f32 %v1330_v47, %v1329_v53  ;;  %v1341_v53 = vrot.slane %v1340_v54, 2  ;;  %v1354_v47 = vadd.f32 %v3499_v62, %v3495_v15  ;;  %v2444_v51 = vld [vmem:[%s2880_s10 + $0x120] sm:$0xff]  ;;  %1726 = vmatpush.msrb.mxu0 %v1653_v29 }
 0x31d   : > { %v1332_v41 = vrot.slane %v1331_v23, 2  ;;  %v1342_v26 = vadd.f32 %v1341_v53, %v1340_v54  ;;  %v3577_v28 = vadd.f32 %v1354_v47, %v3531_v45  ;;  %v1623_v47 = vld [vmem:[#allocation6 + $0x2d0] sm:$0xff] }
 0x31e   : > { %1705 = vmatpush.msrb.mxu1 %v1623_v47  ;;  %v3612_v47 = vmul.f32 %v2445_v20, %v3465_v13  ;;  %v2449_v20 = vld [vmem:[%s2880_s10 + $0xf0] sm:$0xff] }
 0x31f   : > { %v1333_v49 = vadd.f32 %v1332_v41, %v1331_v23  ;;  %v3567_v23 = vmax.f32 %v1210_v58, %v3531_v45  ;;  %v1343_v53 = vrot.slane %v1342_v26, 1  ;;  %v3581_v58 = vmul.f32 %v2441_v60, %v3429_v37  ;;  %v1587_v60 = vld [vmem:[#allocation6 + $0x1b0] sm:$0xff] }
 0x320   : > { %4454 = vst [vmem:[#allocation38_spill] sm:$0xff] %v3612_v47  ;;  %1687 = vmatpush.msra.mxu3 %v1587_v60  ;;  %1706 = vmatpush.msrb.mxu1 %v1621_v8  ;;  %v1551_v60 = vld [vmem:[#allocation6 + $0x90] sm:$0xff] }
 0x321   : > { %v1334_v41 = vrot.slane %v1333_v49, 1  ;;  %4450 = vst [vmem:[#allocation34_spill] sm:$0xff] %v3581_v58  ;;  %v1583_v8 = vld [vmem:[#allocation6 + $0x190] sm:$0xff] }
 0x322   : > { %1707 = vmatpush.msrb.mxu1 %v1619_v16 }
 0x323   : > { %v3599_v62 = vadd.f32 %v1334_v41, %v1333_v49  ;;  %v2446_v49 = vld [vmem:[%s2880_s10 + $0x100] sm:$0xff] }
 0x325   : > { %v3479_v18 = vpop.permute.xlu2 %1037 }
 0x326   : > { %v925_v2 = vpop.permute.xlu1 %924 }
 0x327   : > { %v3534_v4 = vmul.f32 %v2435_v46, %v925_v2  ;;  %v3537_v22 = vmul.f32 %v2436_v25, %v925_v2  ;;  %v1175_v2 = vmax.f32 %v1174_v6, %v3515_v32  ;;  %v1190_v6 = vrot.slane %v1189_v38, 1  ;;  %v1557_v25 = vld [vmem:[#allocation6 + $0xc0] sm:$0xff] }
 0x328   : > { %v1219_v46 = vmax.f32 %v3557_v31, %v3543_v21  ;;  %1666 = vmatpush.msra.mxu2 %v1557_v25  ;;  %v3601_v25 = vadd.f32 %v1343_v53, %v1342_v26  ;;  %v3616_v26 = vmul.f32 %v2446_v49, %v3461_v40  ;;  %v1585_v53 = vld [vmem:[#allocation6 + $0x1a0] sm:$0xff]  ;;  %v1651_v49 = vld [vmem:[#allocation6 + $0x3b0] sm:$0xff] }
 0x329   : > { %v1167_v54 = vmax.f32 %v1166_v3, %v3534_v4  ;;  %v1176_v52 = vmax.f32 %v1175_v2, %v3537_v22  ;;  %v1311_v17 = vadd.f32 %v1310_v33, %v3534_v4  ;;  %v1320_v44 = vadd.f32 %v1319_v27, %v3537_v22  ;;  %v1019_v2 = vpop.permute.xlu0 %1018  ;;  %1688 = vmatpush.msra.mxu3 %v1585_v53 }
 0x32a   : > { %v1372_v3 = vadd.f32 %v3547_v55, %v3561_v12  ;;  %v3595_v48 = vmax.f32 %v1189_v38, %v1190_v6  ;;  %v3605_v38 = vmul.f32 %v2443_v39, %v3465_v13  ;;  %1667 = vmatpush.msra.mxu2 %v1555_v63  ;;  %v1553_v6 = vld [vmem:[#allocation6 + $0xa0] sm:$0xff]  ;;  %v3608_v15 = vmul.f32 %v2444_v51, %v1019_v2  ;;  %v2447_v39 = vld [vmem:[%s2880_s10 + $0xb0] sm:$0xff]  ;;  %v2448_v63 = vld [vmem:[%s2880_s10 + $0x108] sm:$0xff] }
 0x32b   : > { %v1168_v33 = vrot.slane %v1167_v54, 4  ;;  %v1177_v27 = vrot.slane %v1176_v52, 4  ;;  %v1312_v45 = vrot.slane %v1311_v17, 4  ;;  %v1321_v21 = vrot.slane %v1320_v44, 4  ;;  %4455 = vst [vmem:[#allocation39_spill] sm:$0xff] %v3616_v26  ;;  %1727 = vmatpush.msrb.mxu0 %v1651_v49  ;;  %1689 = vmatpush.msra.mxu3 %v1583_v8 }
 0x32c   : > { %4452 = vst [vmem:[#allocation36_spill] sm:$0xff] %v3605_v38  ;;  %v3623_v51 = vmul.f32 %v2448_v63, %v3461_v40  ;;  %1668 = vmatpush.msra.mxu2 %v1553_v6  ;;  %v3632_v34 = vmul.f32 %v2451_v50, %v1019_v2  ;;  %v1220_v40 = vmax.f32 %v1219_v46, %v3605_v38  ;;  %v1549_v46 = vld [vmem:[#allocation6 + $0x80] sm:$0xff] }
 0x32d   : > { %4453 = vst [vmem:[#allocation37_spill] sm:$0xff] %v3608_v15  ;;  %v1169_v35 = vmax.f32 %v1167_v54, %v1168_v33  ;;  %v1178_v13 = vmax.f32 %v1176_v52, %v1177_v27  ;;  %v1313_v0 = vadd.f32 %v1312_v45, %v1311_v17  ;;  %v1322_v61 = vadd.f32 %v1321_v21, %v1320_v44  ;;  %v2452_v54 = vld [vmem:[%s2880_s10 + $0xb8] sm:$0xff]  ;;  %v1617_v33 = vld [vmem:[#allocation6 + $0x2a0] sm:$0xff] }
 0x32e   : > { %4457 = vst [vmem:[#allocation41_spill] sm:$0xff] %v3623_v51  ;;  %v4462_v45 = vmax.f32 %v3561_v12, %v3547_v55  ;;  %v1373_v17 = vadd.f32 %v1372_v3, %v3612_v47  ;;  %v1649_v44 = vld [vmem:[#allocation6 + $0x3a0] sm:$0xff]  ;;  %v1237_v2 = vmax.f32 %v3616_v26, %v3581_v58  ;;  %v1246_v27 = vmax.f32 %v3623_v51, %v3585_v59 }
 0x32f   : > { %4460 = vst [vmem:[#allocation44_spill] sm:$0xff] %v3632_v34  ;;  %1669 = vmatpush.msra.mxu2 %v1551_v60  ;;  %v1581_v6 = vld [vmem:[#allocation6 + $0x180] sm:$0xff]  ;;  %v1314_v53 = vrot.slane %v1313_v0, 2  ;;  %v1323_v3 = vrot.slane %v1322_v61, 2  ;;  %1708 = vmatpush.msrb.mxu1 %v1617_v33  ;;  %v1547_v60 = vld [vmem:[#allocation6 + $0x70] sm:$0xff] }
 0x330   : > { %v1229_v21 = vmax.f32 %v4462_v45, %v3612_v47  ;;  %1728 = vmatpush.msrb.mxu0 %v1649_v44  ;;  %1690 = vmatpush.msra.mxu3 %v1581_v6  ;;  %v1545_v6 = vld [vmem:[#allocation6 + $0x60] sm:$0xff]  ;;  %v1607_v47 = vld [vmem:[#allocation6 + $0x250] sm:$0xff] }
 0x331   : > { %1670 = vmatpush.msra.mxu2 %v1549_v46  ;;  %v1645_v46 = vld [vmem:[#allocation6 + $0x380] sm:$0xff] }
 0x333   : > { %1671 = vmatpush.msra.mxu2 %v1547_v60 }
 0x335   : > { %v3549_v7 = vpop.permute.xlu2 %1056  ;;  %1672 = vmatpush.msra.mxu2 %v1545_v6 }
 0x336   : > { %v3539_v9 = vpop.permute.xlu1 %1031 }
 0x345   : > { %v1000_v31 = vpop.permute.xlu2 %999 }
 0x346   : > { %v975_v37 = vpop.permute.xlu1 %974  ;;  %v3626_v1 = vmul.f32 %v2449_v20, %v1000_v31 }
 0x347   : > { %v3619_v41 = vmul.f32 %v2447_v39, %v975_v37  ;;  %v2450_v39 = vld [vmem:[%s2880_s10 + $0xf8] sm:$0xff]  ;;  %v3636_v52 = vmul.f32 %v2452_v54, %v975_v37  ;;  %v1170_v37 = vrot.slane %v1169_v35, 2  ;;  %v1082_v54 = vpop.permute.xlu0 %1081 }
 0x348   : > { %4458 = vst [vmem:[#allocation42_spill] sm:$0xff] %v3626_v1  ;;  %v3629_v30 = vmul.f32 %v2450_v39, %v1000_v31  ;;  %v1364_v31 = vadd.f32 %v1363_v56, %v3605_v38  ;;  %v1221_v29 = vmax.f32 %v1220_v40, %v3626_v1  ;;  %v1179_v56 = vrot.slane %v1178_v13, 2  ;;  %v1647_v39 = vld [vmem:[#allocation6 + $0x390] sm:$0xff]  ;;  %v2454_v38 = vld [vmem:[%s2880_s10 + $0x1c8] sm:$0xff] }
 0x349   : > { %4456 = vst [vmem:[#allocation40_spill] sm:$0xff] %v3619_v41  ;;  %v1347_v50 = vadd.f32 %v3574_v10, %v3619_v41  ;;  %v1615_v10 = vld [vmem:[#allocation6 + $0x290] sm:$0xff]  ;;  %v1203_v20 = vmax.f32 %v3564_v19, %v3619_v41  ;;  %v1212_v49 = vmax.f32 %v3567_v23, %v3636_v52  ;;  %v1381_v40 = vadd.f32 %v3581_v58, %v3616_v26  ;;  %v1613_v19 = vld [vmem:[#allocation6 + $0x280] sm:$0xff]  ;;  %v1560_v41 = vld [vmem:[#allocation6 + $0xd8] sm:$0xff] }
 0x34a   : > { %4459 = vst [vmem:[#allocation43_spill] sm:$0xff] %v3629_v30  ;;  %v1230_v16 = vmax.f32 %v1229_v21, %v3629_v30  ;;  %v1365_v63 = vadd.f32 %v1364_v31, %v3626_v1  ;;  %v1374_v8 = vadd.f32 %v1373_v17, %v3629_v30  ;;  %v1356_v45 = vadd.f32 %v3577_v28, %v3636_v52  ;;  %v1579_v21 = vld [vmem:[#allocation6 + $0x170] sm:$0xff]  ;;  %v1609_v1 = vld [vmem:[#allocation6 + $0x260] sm:$0xff] }
 0x34b   : > { %4461 = vst [vmem:[#allocation45_spill] sm:$0xff] %v3636_v52  ;;  %v1348_v33 = vrot.slane %v1347_v50, 4  ;;  %v1390_v23 = vadd.f32 %v3585_v59, %v3623_v51  ;;  %v3664_v31 = vmax.f32 %v1169_v35, %v1170_v37  ;;  %v1222_v44 = vrot.slane %v1221_v29, 4  ;;  %1709 = vmatpush.msrb.mxu1 %v1615_v10  ;;  %1729 = vmatpush.msrb.mxu0 %v1647_v39  ;;  %v1577_v10 = vld [vmem:[#allocation6 + $0x160] sm:$0xff]  ;;  %v1611_v51 = vld [vmem:[#allocation6 + $0x270] sm:$0xff]  ;;  %v1660_v52 = vld [vmem:[#allocation6 + $0x3f8] sm:$0xff] }
 0x34c   : > { %v3667_v58 = vmax.f32 %v1237_v2, %v3608_v15  ;;  %v3669_v26 = vmax.f32 %v1178_v13, %v1179_v56  ;;  %v3671_v17 = vadd.f32 %v1314_v53, %v1313_v0  ;;  %v3673_v30 = vadd.f32 %v1323_v3, %v1322_v61  ;;  %1691 = vmatpush.msra.mxu3 %v1579_v21  ;;  %v1643_v56 = vld [vmem:[#allocation6 + $0x370] sm:$0xff]  ;;  %v2453_v39 = vld [vmem:[%s2880_s10 + $0x1c0] sm:$0xff] }
 0x34d   : > { %v1231_v28 = vrot.slane %v1230_v16, 4  ;;  %v1366_v59 = vrot.slane %v1365_v63, 4  ;;  %v1204_v35 = vrot.slane %v1203_v20, 4  ;;  %v1213_v37 = vrot.slane %v1212_v49, 4  ;;  %1710 = vmatpush.msrb.mxu1 %v1613_v19  ;;  %1730 = vmatpush.msrb.mxu0 %v1645_v46  ;;  %v1543_v53 = vld [vmem:[#allocation6 + $0x50] sm:$0xff] }
 0x34e   : > { %v3676_v2 = vmax.f32 %v1246_v27, %v3632_v34  ;;  %v1375_v13 = vrot.slane %v1374_v8, 4  ;;  %v3678_v0 = vadd.f32 %v1348_v33, %v1347_v50  ;;  %v1357_v61 = vrot.slane %v1356_v45, 4  ;;  %v1575_v27 = vld [vmem:[#allocation6 + $0x150] sm:$0xff]  ;;  %1692 = vmatpush.msra.mxu3 %v1577_v10  ;;  %1673 = vmatpush.msra.mxu2 %v1543_v53  ;;  %v2457_v53 = vld [vmem:[%s2880_s10 + $0x1e0] sm:$0xff] }
 0x34f   : > { %v3681_v3 = vadd.f32 %v1381_v40, %v3608_v15  ;;  %v3684_v60 = vmul.f32 %v2453_v39, %v1082_v54  ;;  %v1172_v21 = vrot.slane %v3664_v31, 1  ;;  %v3687_v19 = vmax.f32 %v1221_v29, %v1222_v44  ;;  %1711 = vmatpush.msrb.mxu1 %v1611_v51  ;;  %v1641_v39 = vld [vmem:[#allocation6 + $0x360] sm:$0xff]  ;;  %1731 = vmatpush.msrb.mxu0 %v1643_v56 }
 0x350   : > { %v3690_v50 = vadd.f32 %v1390_v23, %v3632_v34  ;;  %v1181_v33 = vrot.slane %v3669_v26, 1  ;;  %v1316_v46 = vrot.slane %v3671_v17, 1  ;;  %v1325_v40 = vrot.slane %v3673_v30, 1  ;;  %v1541_v29 = vld [vmem:[#allocation6 + $0x40] sm:$0xff]  ;;  %1693 = vmatpush.msra.mxu3 %v1575_v27 }
 0x351   : > { %4463 = vst [vmem:[#allocation46_spill] sm:$0xff] %v3684_v60  ;;  %v3695_v15 = vmax.f32 %v1230_v16, %v1231_v28  ;;  %v3697_v44 = vadd.f32 %v1366_v59, %v1365_v63  ;;  %v3699_v6 = vmax.f32 %v1203_v20, %v1204_v35  ;;  %v3701_v23 = vmax.f32 %v1212_v49, %v1213_v37  ;;  %v1573_v34 = vld [vmem:[#allocation6 + $0x140] sm:$0xff]  ;;  %v1094_v16 = vpop.permute.xlu0 %1093  ;;  %v1639_v63 = vld [vmem:[#allocation6 + $0x350] sm:$0xff]  ;;  %v2456_v37 = vld [vmem:[%s2880_s10 + $0x158] sm:$0xff] }
 0x352   : > { %v3704_v55 = vmul.f32 %v2454_v38, %v1082_v54  ;;  %v3706_v28 = vadd.f32 %v1375_v13, %v1374_v8  ;;  %v1350_v51 = vrot.slane %v3678_v0, 2  ;;  %v3709_v59 = vadd.f32 %v1357_v61, %v1356_v45  ;;  %1712 = vmatpush.msrb.mxu1 %v1609_v1  ;;  %v1539_v20 = vld [vmem:[#allocation6 + $0x30] sm:$0xff]  ;;  %1732 = vmatpush.msrb.mxu0 %v1641_v39  ;;  %v1605_v1 = vld [vmem:[#allocation6 + $0x240] sm:$0xff] }
 0x353   : > { %v2455_v49 = vld [vmem:[%s2880_s10 + $0x150] sm:$0xff]  ;;  %v3717_v38 = vmul.f32 %v2456_v37, %v3479_v18  ;;  %v3720_v54 = vmax.f32 %v3664_v31, %v1172_v21  ;;  %v1224_v8 = vrot.slane %v3687_v19, 2  ;;  %1674 = vmatpush.msra.mxu2 %v1541_v29  ;;  %v3724_v10 = vmax.f32 %v3669_v26, %v1181_v33  ;;  %1694 = vmatpush.msra.mxu3 %v1573_v34  ;;  %v1637_v31 = vld [vmem:[#allocation6 + $0x340] sm:$0xff]  ;;  %v2460_v37 = vld [vmem:[%s2880_s10 + $0x188] sm:$0xff] }
 0x354   : > { %4464 = vst [vmem:[#allocation47_spill] sm:$0xff] %v3704_v55  ;;  %v3713_v35 = vmul.f32 %v2455_v49, %v3479_v18  ;;  %v1571_v45 = vld [vmem:[#allocation6 + $0x130] sm:$0xff]  ;;  %v1317_v13 = vadd.f32 %v1316_v46, %v3671_v17  ;;  %v1326_v61 = vadd.f32 %v1325_v40, %v3673_v30  ;;  %v1233_v18 = vrot.slane %v3695_v15, 2  ;;  %1713 = vmatpush.msrb.mxu1 %v1607_v47  ;;  %v1537_v56 = vld [vmem:[#allocation6 + $0x20] sm:$0xff]  ;;  %v2458_v46 = vld [vmem:[%s2880_s10 + $0x1e8] sm:$0xff] }
 0x355   : > { %4465 = vst [vmem:[#allocation48_spill] sm:$0xff] %v3717_v38  ;;  %v3730_v21 = vmul.f32 %v2457_v53, %v1094_v16  ;;  %v1368_v27 = vrot.slane %v3697_v44, 2  ;;  %v1206_v26 = vrot.slane %v3699_v6, 2  ;;  %v1215_v33 = vrot.slane %v3701_v23, 2  ;;  %1733 = vmatpush.msrb.mxu0 %v1639_v63  ;;  %1675 = vmatpush.msra.mxu2 %v1539_v20  ;;  %v1569_v30 = vld [vmem:[#allocation6 + $0x120] sm:$0xff]  ;;  %v1603_v17 = vld [vmem:[#allocation6 + $0x230] sm:$0xff] }
 0x356   : > { %v3736_v34 = vmul.f32 %v2458_v46, %v1094_v16  ;;  %v1377_v47 = vrot.slane %v3706_v28, 2  ;;  %v3740_v40 = vadd.f32 %v1350_v51, %v3678_v0  ;;  %v1359_v39 = vrot.slane %v3709_v59, 2  ;;  %1695 = vmatpush.msra.mxu3 %v1571_v45  ;;  %1714 = vmatpush.msrb.mxu1 %v1605_v1  ;;  %v1635_v29 = vld [vmem:[#allocation6 + $0x330] sm:$0xff]  ;;  %v2459_v63 = vld [vmem:[%s2880_s10 + $0x180] sm:$0xff] }
 0x357   : > { %4466 = vst [vmem:[#allocation49_spill] sm:$0xff] %v3730_v21  ;;  %v1535_v49 = vld [vmem:[#allocation6 + $0x10] sm:$0xff]  ;;  %v3745_v20 = vmul.f32 %v2459_v63, %v3549_v7  ;;  %v3749_v16 = vmul.f32 %v2460_v37, %v3549_v7  ;;  %v3752_v53 = vmax.f32 %v3687_v19, %v1224_v8  ;;  %1734 = vmatpush.msrb.mxu0 %v1637_v31  ;;  %v1601_v51 = vld [vmem:[#allocation6 + $0x220] sm:$0xff]  ;;  %v3755_v45 = vmul.f32 0.03125, %v3599_v62  ;;  %v2462_v63 = vld [vmem:[%s2880_s10 + $0x148] sm:$0xff] }
 0x358   : > { %4467 = vst [vmem:[#allocation50_spill] sm:$0xff] %v3736_v34  ;;  %1676 = vmatpush.msra.mxu2 %v1537_v56  ;;  %v1567_v0 = vld [vmem:[#allocation6 + $0x110] sm:$0xff]  ;;  %v2461_v1 = vld [vmem:[%s2880_s10 + $0x140] sm:$0xff]  ;;  %v3763_v12 = vmul.f32 %v2462_v63, %v3539_v9  ;;  %v1234_v7 = vmax.f32 %v3695_v15, %v1233_v18  ;;  %1696 = vmatpush.msra.mxu3 %v1569_v30  ;;  %v1456_v31 = vmul.f32 0.03125, %v3601_v25  ;;  %v1453_v15 = vmul.f32 0.03125, %v1317_v13 }
 0x359   : > { %4468 = vst [vmem:[#allocation51_spill] sm:$0xff] %v3745_v20  ;;  %v3759_v46 = vmul.f32 %v2461_v1, %v3539_v9  ;;  %1715 = vmatpush.msrb.mxu1 %v1603_v17  ;;  %v1633_v19 = vld [vmem:[#allocation6 + $0x320] sm:$0xff]  ;;  %v3768_v56 = vadd.f32 %v1368_v27, %v3697_v44  ;;  %v3771_v62 = vmax.f32 %v3699_v6, %v1206_v26  ;;  %v1599_v1 = vld [vmem:[#allocation6 + $0x210] sm:$0xff]  ;;  %v1352_v30 = vrot.slane %v3740_v40, 1  ;;  %v1564_v6 = vld [vmem:[#allocation6 + $0xf8] sm:$0xff]  ;;  %v1088_v26 = vpop.permute.xlu2 %1087 }
 0x35a   : > { %4469 = vst [vmem:[#allocation52_spill] sm:$0xff] %v3749_v16  ;;  %v1533_v8 = vld [vmem:[#allocation6] sm:$0xff]  ;;  %v3774_v37 = vmax.f32 %v3701_v23, %v1215_v33  ;;  %1735 = vmatpush.msrb.mxu0 %v1635_v29  ;;  %1677 = vmatpush.msra.mxu2 %v1535_v49  ;;  %v3777_v18 = vadd.f32 %v1377_v47, %v3706_v28  ;;  %v1631_v44 = vld [vmem:[#allocation6 + $0x310] sm:$0xff]  ;;  %v1454_v27 = vmul.f32 0.03125, %v1326_v61  ;;  %v1226_v23 = vrot.slane %v3752_v53, 1  ;;  %v1596_v33 = vld [vmem:[#allocation6 + $0x1f8] sm:$0xff] }
 0x35b   : > { %v1565_v9 = vld [vmem:[#allocation6 + $0x100] sm:$0xff]  ;;  %v1360_v25 = vadd.f32 %v1359_v39, %v3709_v59  ;;  %1697 = vmatpush.msra.mxu3 %v1567_v0  ;;  %1716 = vmatpush.msrb.mxu1 %v1601_v51  ;;  %v3785_v28 = vsel %vm722_vm3, %v3595_v48, %v3720_v54  ;;  %v3790_v59 = vsel %vm722_vm3, %v3597_v5, %v3724_v10  ;;  %v1235_v47 = vrot.slane %v1234_v7, 1  ;;  %v1063_v39 = vpop.permute.xlu1 %1062  ;;  %v1562_v0 = vld [vmem:[#allocation6 + $0xe8] sm:$0xff]  ;;  %v1628_v61 = vld [vmem:[#allocation6 + $0x2f8] sm:$0xff] }
 0x35c   : > { %1736 = vmatpush.msrb.mxu0 %v1633_v19  ;;  %1678 = vmatpush.msra.mxu2 %v1533_v8  ;;  %v3798_v17 = vadd.f32 %v3713_v35, %v3759_v46  ;;  %v1597_v48 = vld [vmem:[#allocation6 + $0x200] sm:$0xff]  ;;  %v3802_v5 = vadd.f32 %v3717_v38, %v3763_v12  ;;  %v1370_v54 = vrot.slane %v3768_v56, 1  ;;  %v1208_v10 = vrot.slane %v3771_v62, 1  ;;  %v2463_v8 = vld [vmem:[%s2880_s10 + $0x1d0] sm:$0xff] }
 0x35d   : > { %1698 = vmatpush.msra.mxu3 %v1565_v9  ;;  %1717 = vmatpush.msrb.mxu1 %v1599_v1  ;;  %v1217_v29 = vrot.slane %v3774_v37, 1  ;;  %v1629_v49 = vld [vmem:[#allocation6 + $0x300] sm:$0xff]  ;;  %v1379_v51 = vrot.slane %v3777_v18, 1  ;;  %v1353_v63 = vadd.f32 %v1352_v30, %v3740_v40  ;;  %v1361_v19 = vrot.slane %v1360_v25, 1  ;;  %v1594_v1 = vld [vmem:[#allocation6 + $0x1e8] sm:$0xff] }
 0x35e   : > { %1737 = vmatpush.msrb.mxu0 %v1631_v44  ;;  %1743 = vmatpush.msrb.mxu2 %v1564_v6  ;;  %v3810_v9 = vmul.f32 %v2463_v8, %v1088_v26  ;;  %v3813_v13 = vmax.f32 %v3752_v53, %v1226_v23  ;;  %v2464_v44 = vld [vmem:[%s2880_s10 + $0x1d8] sm:$0xff]  ;;  %v1517_v40 = vsel %vm722_vm3, %v3755_v45, %v1453_v15 }
 0x35f   : > { %1763 = vmatpush.msrb.mxu3 %v1596_v33  ;;  %v3816_v6 = vmul.f32 %v2464_v44, %v1088_v26  ;;  %1718 = vmatpush.msrb.mxu1 %v1597_v48  ;;  %v3821_v30 = vsel %vm722_vm3, %v1456_v31, %v1454_v27  ;;  %v3823_v8 = vmax.f32 %v1234_v7, %v1235_v47  ;;  %v2465_v33 = vld [vmem:[%s2880_s10 + $0x190] sm:$0xff]  ;;  %v1592_v23 = vld [vmem:[#allocation6 + $0x1d8] sm:$0xff]  ;;  %v1626_v26 = vld [vmem:[#allocation6 + $0x2e8] sm:$0xff] }
 0x360   : > { %4470 = vst [vmem:[#allocation53_spill] sm:$0xff] %v3810_v9  ;;  %v3826_v36 = vmul.f32 %v2465_v33, %v1063_v39  ;;  %v3829_v53 = vmul.f32 %v2466_v42, %v1063_v39  ;;  %1738 = vmatpush.msrb.mxu0 %v1629_v49  ;;  %1744 = vmatpush.msrb.mxu2 %v1562_v0  ;;  %v1658_v7 = vld [vmem:[#allocation6 + $0x3e8] sm:$0xff]  ;;  %v1457_v42 = vmul.f32 0.03125, %v1353_v63  ;;  %v1588_v49 = vld [vmem:[#allocation6 + $0x1b8] sm:$0xff] }
 0x361   : > { %4471 = vst [vmem:[#allocation54_spill] sm:$0xff] %v3816_v6  ;;  %v1371_v48 = vadd.f32 %v1370_v54, %v3768_v56  ;;  %v1209_v44 = vmax.f32 %v3771_v62, %v1208_v10  ;;  %v1218_v45 = vmax.f32 %v3774_v37, %v1217_v29  ;;  %1764 = vmatpush.msrb.mxu3 %v1594_v1  ;;  %v1558_v31 = vld [vmem:[#allocation6 + $0xc8] sm:$0xff]  ;;  %v1624_v56 = vld [vmem:[#allocation6 + $0x2d8] sm:$0xff] }
 0x362   : > { %4472 = vst [vmem:[#allocation55_spill] sm:$0xff] %v3826_v36  ;;  %1783 = vmatpush.msra.mxu1 %v1628_v61  ;;  %v3835_v15 = vadd.f32 %v1379_v51, %v3777_v18  ;;  %v1362_v27 = vadd.f32 %v1361_v19, %v1360_v25  ;;  %v1291_v47 = vmax.f32 %v3684_v60, %v3810_v9  ;;  %v1590_v39 = vld [vmem:[#allocation6 + $0x1c8] sm:$0xff]  ;;  %v1656_v25 = vld [vmem:[#allocation6 + $0x3d8] sm:$0xff] }
 0x363   : > { %4473 = vst [vmem:[#allocation56_spill] sm:$0xff] %v3829_v53  ;;  %1803 = vmatpush.msra.mxu0 %v1660_v52  ;;  %1745 = vmatpush.msrb.mxu2 %v1560_v41  ;;  %v1300_v62 = vmax.f32 %v3704_v55, %v3816_v6  ;;  %v1435_v37 = vadd.f32 %v3810_v9, %v3684_v60  ;;  %v1556_v54 = vld [vmem:[#allocation6 + $0xb8] sm:$0xff]  ;;  %v1622_v0 = vld [vmem:[#allocation6 + $0x2c8] sm:$0xff]  ;;  %v1459_v51 = vmul.f32 0.03125, %v1371_v48 }
 0x364   : > { %v1444_v61 = vadd.f32 %v3816_v6, %v3704_v55  ;;  %1765 = vmatpush.msrb.mxu3 %v1592_v23  ;;  %1784 = vmatpush.msra.mxu1 %v1626_v26  ;;  %v1273_v52 = vmax.f32 %v3745_v20, %v3826_v36  ;;  %v1282_v41 = vmax.f32 %v3749_v16, %v3829_v53  ;;  %v1654_v19 = vld [vmem:[#allocation6 + $0x3c8] sm:$0xff]  ;;  %v1458_v26 = vmul.f32 0.03125, %v1362_v27  ;;  %v3865_v55 = vld [vmem:[%s2880_s10 + $0x160] sm:$0xff]  ;;  %v1552_v27 = vld [vmem:[#allocation6 + $0x98] sm:$0xff] }
 0x365   : > { %v1069_v18 = vpop.permute.xlu2 %1068  ;;  %v1417_v10 = vadd.f32 %v3826_v36, %v3745_v20  ;;  %1804 = vmatpush.msra.mxu0 %v1658_v7  ;;  %1746 = vmatpush.msrb.mxu2 %v1558_v31  ;;  %v1426_v63 = vadd.f32 %v3829_v53, %v3749_v16  ;;  %v1554_v1 = vld [vmem:[#allocation6 + $0xa8] sm:$0xff]  ;;  %v1486_v33 = vsel %vm724_vm4, %v1209_v44, %v3785_v28  ;;  %v2467_v7 = vld [vmem:[%s2880_s10 + $0x1a0] sm:$0xff]  ;;  %v1612_v60 = vld [vmem:[#allocation6 + $0x278] sm:$0xff] }
 0x366   : > { %v1044_v29 = vpop.permute.xlu1 %1043  ;;  %1766 = vmatpush.msrb.mxu3 %v1590_v39  ;;  %1785 = vmatpush.msra.mxu1 %v1624_v56  ;;  %v1493_v23 = vsel %vm724_vm4, %v1218_v45, %v3790_v59  ;;  %v3858_v31 = vmul.f32 %v2467_v7, %v1069_v18  ;;  %v2468_v48 = vld [vmem:[%s2880_s10 + $0x1a8] sm:$0xff]  ;;  %v1620_v56 = vld [vmem:[#allocation6 + $0x2b8] sm:$0xff]  ;;  %v1518_v9 = vsel %vm724_vm4, %v1457_v42, %v1517_v40 }
 0x367   : > { %v3861_v6 = vmul.f32 %v2468_v48, %v1069_v18  ;;  %1805 = vmatpush.msra.mxu0 %v1656_v25  ;;  %1747 = vmatpush.msrb.mxu2 %v1556_v54  ;;  %v1586_v39 = vld [vmem:[#allocation6 + $0x1a8] sm:$0xff]  ;;  %4476 = vst [vmem:[#allocation59_spill] sm:$0xff] %v3865_v55  ;;  %v3868_v28 = vmul.f32 %v3865_v55, %v1044_v29  ;;  %v1652_v45 = vld [vmem:[#allocation6 + $0x3b8] sm:$0xff] }
 0x368   : > { %4474 = vst [vmem:[#allocation57_spill] sm:$0xff] %v3858_v31  ;;  %v3871_v59 = vmax.f32 %v1291_v47, %v3730_v21  ;;  %v3874_v44 = vmax.f32 %v1300_v62, %v3736_v34  ;;  %1767 = vmatpush.msrb.mxu3 %v1588_v49  ;;  %1786 = vmatpush.msra.mxu1 %v1622_v0  ;;  %v3877_v18 = vld [vmem:[%s2880_s10 + $0x168] sm:$0xff]  ;;  %v1584_v47 = vld [vmem:[#allocation6 + $0x198] sm:$0xff] }
 0x369   : > { %4475 = vst [vmem:[#allocation58_spill] sm:$0xff] %v3861_v6  ;;  %v3880_v25 = vmul.f32 %v3877_v18, %v1044_v29  ;;  %v3883_v40 = vadd.f32 %v1435_v37, %v3730_v21  ;;  %v3886_v42 = vadd.f32 %v1444_v61, %v3736_v34  ;;  %1806 = vmatpush.msra.mxu0 %v1654_v19  ;;  %v1618_v62 = vld [vmem:[#allocation6 + $0x2a8] sm:$0xff]  ;;  %v1616_v7 = vld [vmem:[#allocation6 + $0x298] sm:$0xff] }
 0x36a   : > { %4477 = vst [vmem:[#allocation60_spill] sm:$0xff] %v3868_v28  ;;  %1748 = vmatpush.msrb.mxu2 %v1554_v1  ;;  %1768 = vmatpush.msrb.mxu3 %v1586_v39  ;;  %v1650_v54 = vld [vmem:[#allocation6 + $0x3a8] sm:$0xff]  ;;  %v3890_v0 = vsel %vm726_vm5, %v3813_v13, %v1486_v33  ;;  %v3894_v29 = vsel %vm726_vm5, %v3823_v8, %v1493_v23  ;;  %v1576_v36 = vld [vmem:[#allocation6 + $0x158] sm:$0xff] }
 0x36b   : > { %4478 = vst [vmem:[#allocation61_spill] sm:$0xff] %v3877_v18  ;;  %1787 = vmatpush.msra.mxu1 %v1620_v56  ;;  %v1550_v49 = vld [vmem:[#allocation6 + $0x88] sm:$0xff]  ;;  %v3897_v37 = vsel %vm726_vm5, %v1459_v51, %v1518_v9  ;;  %v1274_v61 = vmax.f32 %v1273_v52, %v3858_v31  ;;  %v1283_v19 = vmax.f32 %v1282_v41, %v3861_v6  ;;  %v1648_v51 = vld [vmem:[#allocation6 + $0x398] sm:$0xff] }
 0x36c   : > { %4479 = vst [vmem:[#allocation62_spill] sm:$0xff] %v3880_v25  ;;  %1807 = vmatpush.msra.mxu0 %v1652_v45  ;;  %1749 = vmatpush.msrb.mxu2 %v1552_v27  ;;  %v1582_v1 = vld [vmem:[#allocation6 + $0x188] sm:$0xff]  ;;  %v3903_v13 = vsel %vm724_vm4, %v1458_v26, %v3821_v30  ;;  %v1418_v8 = vadd.f32 %v1417_v10, %v3858_v31  ;;  %v3920_v10 = vld [vmem:[%s2880_s10 + $0x1b0] sm:$0xff]  ;;  %v3926_v26 = vld [vmem:[%s2880_s10 + $0x1b8] sm:$0xff] }
 0x36d   : > { %v1427_v33 = vadd.f32 %v1426_v63, %v3861_v6  ;;  %v4480_v9 = vmax.f32 %v3759_v46, %v3713_v35  ;;  %1769 = vmatpush.msrb.mxu3 %v1584_v47  ;;  %1788 = vmatpush.msra.mxu1 %v1618_v62  ;;  %v4481_v30 = vmax.f32 %v3763_v12, %v3717_v38  ;;  %v1548_v56 = vld [vmem:[#allocation6 + $0x78] sm:$0xff]  ;;  %v3936_v27 = vld [vmem:[%s2880_s10 + $0x130] sm:$0xff]  ;;  %v1646_v21 = vld [vmem:[#allocation6 + $0x388] sm:$0xff] }
 0x36e   : > { %4482 = vst [vmem:[#allocation63_spill] sm:$0xff] %v3920_v10  ;;  %1808 = vmatpush.msra.mxu0 %v1650_v54  ;;  %1750 = vmatpush.msrb.mxu2 %v1550_v49  ;;  %v3933_v45 = vadd.f32 %v3798_v17, %v3868_v28  ;;  %v3942_v62 = vld [vmem:[%s2880_s10 + $0x138] sm:$0xff]  ;;  %v1614_v54 = vld [vmem:[#allocation6 + $0x288] sm:$0xff] }
 0x36f   : > { %v3911_v52 = vmax.f32 %v4480_v9, %v3868_v28  ;;  %v3917_v23 = vmax.f32 %v4481_v30, %v3880_v25  ;;  %4484 = vst [vmem:[#allocation65_spill] sm:$0xff] %v3926_v26  ;;  %1770 = vmatpush.msrb.mxu3 %v1582_v1  ;;  %1789 = vmatpush.msra.mxu1 %v1616_v7  ;;  %v1610_v18 = vld [vmem:[#allocation6 + $0x268] sm:$0xff] }
 0x370   : > { %4486 = vst [vmem:[#allocation67_spill] sm:$0xff] %v3942_v62  ;;  %1809 = vmatpush.msra.mxu0 %v1648_v51  ;;  %1751 = vmatpush.msrb.mxu2 %v1548_v56  ;;  %v1642_v20 = vld [vmem:[#allocation6 + $0x368] sm:$0xff] }
 0x371   : > { %1790 = vmatpush.msra.mxu1 %v1614_v54 }
 0x372   : > { %1810 = vmatpush.msra.mxu0 %v1646_v21 }
 0x373   : > { %1791 = vmatpush.msra.mxu1 %v1612_v60  ;;  %v1409_v60 = vadd.f32 %v3802_v5, %v3880_v25 }
 0x375   : > { %v1075_v41 = vpop.permute.xlu2 %1074  ;;  %1792 = vmatpush.msra.mxu1 %v1610_v18 }
 0x376   : > { %v3923_v63 = vmul.f32 %v3920_v10, %v1075_v41  ;;  %v3929_v48 = vmul.f32 %v3926_v26, %v1075_v41  ;;  %v1025_v39 = vpop.permute.xlu1 %1024  ;;  %v1580_v41 = vld [vmem:[#allocation6 + $0x178] sm:$0xff]  ;;  %v1546_v26 = vld [vmem:[#allocation6 + $0x68] sm:$0xff] }
 0x377   : > { %v3939_v47 = vmul.f32 %v3936_v27, %v1025_v39  ;;  %v3945_v9 = vmul.f32 %v3942_v62, %v1025_v39  ;;  %1771 = vmatpush.msrb.mxu3 %v1580_v41  ;;  %1752 = vmatpush.msrb.mxu2 %v1546_v26 }
 0x378   : > { %4483 = vst [vmem:[#allocation64_spill] sm:$0xff] %v3923_v63  ;;  %v1275_v49 = vmax.f32 %v1274_v61, %v3923_v63  ;;  %v1284_v30 = vmax.f32 %v1283_v19, %v3929_v48  ;;  %v1419_v17 = vadd.f32 %v1418_v8, %v3923_v63  ;;  %v1428_v34 = vadd.f32 %v1427_v33, %v3929_v48  ;;  %v1578_v19 = vld [vmem:[#allocation6 + $0x168] sm:$0xff] }
 0x379   : > { %4485 = vst [vmem:[#allocation66_spill] sm:$0xff] %v3929_v48  ;;  %v1239_v10 = vmax.f32 %v3667_v58, %v3939_v47  ;;  %v1248_v1 = vmax.f32 %v3676_v2, %v3945_v9  ;;  %v1383_v7 = vadd.f32 %v3681_v3, %v3939_v47  ;;  %v1392_v61 = vadd.f32 %v3690_v50, %v3945_v9  ;;  %v1644_v2 = vld [vmem:[#allocation6 + $0x378] sm:$0xff] }
 0x37a   : > { %v1276_v8 = vrot.slane %v1275_v49, 4  ;;  %v1285_v39 = vrot.slane %v1284_v30, 4  ;;  %v1420_v33 = vrot.slane %v1419_v17, 4  ;;  %v1429_v51 = vrot.slane %v1428_v34, 4  ;;  %v1544_v3 = vld [vmem:[#allocation6 + $0x58] sm:$0xff]  ;;  %1772 = vmatpush.msrb.mxu3 %v1578_v19  ;;  %1811 = vmatpush.msra.mxu0 %v1644_v2  ;;  %v1538_v2 = vld [vmem:[#allocation6 + $0x28] sm:$0xff] }
 0x37b   : > { %v1240_v48 = vrot.slane %v1239_v10, 4  ;;  %v1249_v58 = vrot.slane %v1248_v1, 4  ;;  %v1384_v63 = vrot.slane %v1383_v7, 4  ;;  %v1393_v6 = vrot.slane %v1392_v61, 4  ;;  %1753 = vmatpush.msrb.mxu2 %v1544_v3 }
 0x37c   : > { %v1277_v31 = vmax.f32 %v1275_v49, %v1276_v8  ;;  %v1286_v53 = vmax.f32 %v1284_v30, %v1285_v39  ;;  %v1421_v50 = vadd.f32 %v1420_v33, %v1419_v17  ;;  %v1430_v56 = vadd.f32 %v1429_v51, %v1428_v34  ;;  %v1542_v49 = vld [vmem:[#allocation6 + $0x48] sm:$0xff]  ;;  %1773 = vmatpush.msrb.mxu3 %v1576_v36  ;;  %v1572_v33 = vld [vmem:[#allocation6 + $0x138] sm:$0xff] }
 0x37d   : > { %v1241_v16 = vmax.f32 %v1239_v10, %v1240_v48  ;;  %v1250_v55 = vmax.f32 %v1248_v1, %v1249_v58  ;;  %v1385_v41 = vadd.f32 %v1384_v63, %v1383_v7  ;;  %v1394_v54 = vadd.f32 %v1393_v6, %v1392_v61  ;;  %v1574_v10 = vld [vmem:[#allocation6 + $0x148] sm:$0xff]  ;;  %v1608_v48 = vld [vmem:[#allocation6 + $0x258] sm:$0xff]  ;;  %1812 = vmatpush.msra.mxu0 %v1642_v20 }
 0x37e   : > { %v1278_v28 = vrot.slane %v1277_v31, 2  ;;  %v1287_v62 = vrot.slane %v1286_v53, 2  ;;  %v1422_v38 = vrot.slane %v1421_v50, 2  ;;  %v1431_v21 = vrot.slane %v1430_v56, 2  ;;  %v1050_v26 = vpop.permute.xlu1 %1049  ;;  %v1640_v7 = vld [vmem:[#allocation6 + $0x358] sm:$0xff]  ;;  %1754 = vmatpush.msrb.mxu2 %v1542_v49  ;;  %1774 = vmatpush.msrb.mxu3 %v1574_v10 }
 0x37f   : > { %v1242_v30 = vrot.slane %v1241_v16, 2  ;;  %v1251_v17 = vrot.slane %v1250_v55, 2  ;;  %v1386_v34 = vrot.slane %v1385_v41, 2  ;;  %v1395_v19 = vrot.slane %v1394_v54, 2  ;;  %v1540_v61 = vld [vmem:[#allocation6 + $0x38] sm:$0xff]  ;;  %1793 = vmatpush.msra.mxu1 %v1608_v48  ;;  %1813 = vmatpush.msra.mxu0 %v1640_v7  ;;  %v3996_v7 = vld [vmem:[%s2880_s10 + $0x1f0] sm:$0xff] }
 0x380   : > { %v1279_v6 = vmax.f32 %v1277_v31, %v1278_v28  ;;  %v3961_v63 = vmax.f32 %v1286_v53, %v1287_v62  ;;  %v3963_v1 = vadd.f32 %v1422_v38, %v1421_v50  ;;  %v3965_v8 = vadd.f32 %v1431_v21, %v1430_v56  ;;  %v3973_v31 = vld [vmem:[%s2880_s10 + $0x170] sm:$0xff]  ;;  %v3979_v20 = vld [vmem:[%s2880_s10 + $0x178] sm:$0xff]  ;;  %1755 = vmatpush.msrb.mxu2 %v1540_v61 }
 0x381   : > { %v1243_v39 = vmax.f32 %v1241_v16, %v1242_v30  ;;  %v1387_v36 = vadd.f32 %v1386_v34, %v1385_v41  ;;  %v1396_v18 = vadd.f32 %v1395_v19, %v1394_v54  ;;  %v3968_v51 = vmul.f32 0.03125, %v3835_v15  ;;  %4487 = vst [vmem:[#allocation68_spill] sm:$0xff] %v3973_v31  ;;  %v1606_v16 = vld [vmem:[#allocation6 + $0x248] sm:$0xff]  ;;  %1775 = vmatpush.msrb.mxu3 %v1572_v33  ;;  %v1604_v21 = vld [vmem:[#allocation6 + $0x238] sm:$0xff] }
 0x382   : > { %v3970_v5 = vmax.f32 %v1250_v55, %v1251_v17  ;;  %v3976_v38 = vmul.f32 %v3973_v31, %v1050_v26  ;;  %4489 = vst [vmem:[#allocation70_spill] sm:$0xff] %v3979_v20  ;;  %v3982_v53 = vmul.f32 %v3979_v20, %v1050_v26  ;;  %v1280_v15 = vrot.slane %v1279_v6, 1  ;;  %v1638_v55 = vld [vmem:[#allocation6 + $0x348] sm:$0xff]  ;;  %1794 = vmatpush.msra.mxu1 %v1606_v16  ;;  %v1536_v48 = vld [vmem:[#allocation6 + $0x18] sm:$0xff] }
 0x383   : > { %v1244_v28 = vrot.slane %v1243_v39, 1  ;;  %v1388_v62 = vrot.slane %v1387_v36, 1  ;;  %v1397_v58 = vrot.slane %v1396_v18, 1  ;;  %v1570_v54 = vld [vmem:[#allocation6 + $0x128] sm:$0xff]  ;;  %1814 = vmatpush.msra.mxu0 %v1638_v55  ;;  %1756 = vmatpush.msrb.mxu2 %v1538_v2  ;;  %4491 = vst [vmem:[#allocation72_spill] sm:$0xff] %v3996_v7  ;;  %v1568_v33 = vld [vmem:[#allocation6 + $0x118] sm:$0xff] }
 0x384   : > { %4488 = vst [vmem:[#allocation69_spill] sm:$0xff] %v3976_v38  ;;  %v1257_v3 = vmax.f32 %v3911_v52, %v3976_v38  ;;  %v1266_v50 = vmax.f32 %v3917_v23, %v3982_v53  ;;  %v1401_v56 = vadd.f32 %v3933_v45, %v3976_v38  ;;  %v1410_v41 = vadd.f32 %v1409_v60, %v3982_v53  ;;  %v1636_v52 = vld [vmem:[#allocation6 + $0x338] sm:$0xff]  ;;  %v1602_v16 = vld [vmem:[#allocation6 + $0x228] sm:$0xff] }
 0x385   : > { %4490 = vst [vmem:[#allocation71_spill] sm:$0xff] %v3982_v53  ;;  %v1389_v26 = vadd.f32 %v1388_v62, %v1387_v36  ;;  %v1398_v49 = vadd.f32 %v1397_v58, %v1396_v18  ;;  %v3991_v30 = vmax.f32 %v1243_v39, %v1244_v28  ;;  %v1253_v60 = vrot.slane %v3970_v5, 1  ;;  %v4002_v39 = vld [vmem:[%s2880_s10 + $0x1f8] sm:$0xff]  ;;  %1776 = vmatpush.msrb.mxu3 %v1570_v54  ;;  %v1634_v2 = vld [vmem:[#allocation6 + $0x328] sm:$0xff] }
 0x386   : > { %v1258_v34 = vrot.slane %v1257_v3, 4  ;;  %v1267_v23 = vrot.slane %v1266_v50, 4  ;;  %v1402_v19 = vrot.slane %v1401_v56, 4  ;;  %v1411_v10 = vrot.slane %v1410_v41, 4  ;;  %v1100_v45 = vpop.permute.xlu1 %1099  ;;  %4493 = vst [vmem:[#allocation74_spill] sm:$0xff] %v4002_v39  ;;  %1795 = vmatpush.msra.mxu1 %v1604_v21  ;;  %1815 = vmatpush.msra.mxu0 %v1636_v52  ;;  %v1534_v17 = vld [vmem:[#allocation6 + $0x8] sm:$0xff] }
 0x387   : > { %v3999_v61 = vmul.f32 %v3996_v7, %v1100_v45  ;;  %v4005_v36 = vmul.f32 %v4002_v39, %v1100_v45  ;;  %v4007_v18 = vmax.f32 %v1279_v6, %v1280_v15  ;;  %1757 = vmatpush.msrb.mxu2 %v1536_v48  ;;  %1777 = vmatpush.msrb.mxu3 %v1568_v33  ;;  %v1600_v21 = vld [vmem:[#allocation6 + $0x218] sm:$0xff]  ;;  %v1598_v48 = vld [vmem:[#allocation6 + $0x208] sm:$0xff]  ;;  %v1462_v31 = vmul.f32 0.03125, %v1398_v49 }
 0x388   : > { %v1259_v28 = vmax.f32 %v1257_v3, %v1258_v34  ;;  %v1268_v62 = vmax.f32 %v1266_v50, %v1267_v23  ;;  %v1403_v58 = vadd.f32 %v1402_v19, %v1401_v56  ;;  %v1412_v55 = vadd.f32 %v1411_v10, %v1410_v41  ;;  %v1566_v3 = vld [vmem:[#allocation6 + $0x108] sm:$0xff]  ;;  %1796 = vmatpush.msra.mxu1 %v1602_v16 }
 0x389   : > { %4492 = vst [vmem:[#allocation73_spill] sm:$0xff] %v3999_v61  ;;  %v1293_v7 = vmax.f32 %v3871_v59, %v3999_v61  ;;  %v1302_v45 = vmax.f32 %v3874_v44, %v4005_v36  ;;  %v1437_v6 = vadd.f32 %v3883_v40, %v3999_v61  ;;  %v1446_v15 = vadd.f32 %v3886_v42, %v4005_v36  ;;  %v1632_v44 = vld [vmem:[#allocation6 + $0x318] sm:$0xff]  ;;  %v1630_v33 = vld [vmem:[#allocation6 + $0x308] sm:$0xff] }
 0x38a   : > { %4494 = vst [vmem:[#allocation75_spill] sm:$0xff] %v4005_v36  ;;  %v1260_v50 = vrot.slane %v1259_v28, 2  ;;  %v1269_v56 = vrot.slane %v1268_v62, 2  ;;  %v1404_v41 = vrot.slane %v1403_v58, 2  ;;  %v1413_v54 = vrot.slane %v1412_v55, 2  ;;  %1816 = vmatpush.msra.mxu0 %v1634_v2  ;;  %1758 = vmatpush.msrb.mxu2 %v1534_v17 }
 0x38b   : > { %v1294_v52 = vrot.slane %v1293_v7, 4  ;;  %v1303_v59 = vrot.slane %v1302_v45, 4  ;;  %v1438_v34 = vrot.slane %v1437_v6, 4  ;;  %v1447_v23 = vrot.slane %v1446_v15, 4  ;;  %1778 = vmatpush.msrb.mxu3 %v1566_v3  ;;  %1797 = vmatpush.msra.mxu1 %v1600_v21 }
 0x38c   : > { %v1261_v40 = vmax.f32 %v1259_v28, %v1260_v50  ;;  %v1270_v19 = vmax.f32 %v1268_v62, %v1269_v56  ;;  %v1405_v10 = vadd.f32 %v1404_v41, %v1403_v58  ;;  %v1414_v42 = vadd.f32 %v1413_v54, %v1412_v55  ;;  %1817 = vmatpush.msra.mxu0 %v1632_v44 }
 0x38d   : > { %v1295_v39 = vmax.f32 %v1293_v7, %v1294_v52  ;;  %v1304_v36 = vmax.f32 %v1302_v45, %v1303_v59  ;;  %v1439_v61 = vadd.f32 %v1438_v34, %v1437_v6  ;;  %v1448_v20 = vadd.f32 %v1447_v23, %v1446_v15  ;;  %1798 = vmatpush.msra.mxu1 %v1598_v48 }
 0x38e   : > { %v1461_v16 = vmul.f32 0.03125, %v1389_v26  ;;  %v1406_v53 = vrot.slane %v1405_v10, 1  ;;  %v1262_v38 = vrot.slane %v1261_v40, 1  ;;  %v1415_v2 = vrot.slane %v1414_v42, 1  ;;  %1818 = vmatpush.msra.mxu0 %v1630_v33 }
 0x38f   : > { %v1440_v17 = vrot.slane %v1439_v61, 2  ;;  %v1296_v25 = vrot.slane %v1295_v39, 2  ;;  %v1254_v28 = vmax.f32 %v3970_v5, %v1253_v60  ;;  %v1488_v7 = vsel %vm728_vm6, %v3991_v30, %v3890_v0 }
 0x390   : > { %v1263_v62 = vmax.f32 %v1261_v40, %v1262_v38  ;;  %v1271_v58 = vrot.slane %v1270_v19, 1  ;;  %v1305_v55 = vrot.slane %v1304_v36, 2  ;;  %v1449_v45 = vrot.slane %v1448_v20, 2 }
 0x391   : > { %v1297_v26 = vmax.f32 %v1295_v39, %v1296_v25  ;;  %v1407_v49 = vadd.f32 %v1406_v53, %v1405_v10  ;;  %v1424_v6 = vrot.slane %v3963_v1, 1  ;;  %v1441_v56 = vadd.f32 %v1440_v17, %v1439_v61 }
 0x392   : > { %v1489_v15 = vsel %vm730_vm7, %v1263_v62, %v1488_v7  ;;  %v1272_v3 = vmax.f32 %v1270_v19, %v1271_v58  ;;  %v1306_v50 = vmax.f32 %v1304_v36, %v1305_v55  ;;  %v1495_v38 = vsel %vm728_vm6, %v1254_v28, %v3894_v29 }
 0x393   : > { %v1298_v5 = vrot.slane %v1297_v26, 1  ;;  %v1425_v60 = vadd.f32 %v1424_v6, %v3963_v1  ;;  %v1463_v0 = vmul.f32 0.03125, %v1407_v49  ;;  %v1442_v54 = vrot.slane %v1441_v56, 1 }
 0x394   : > { %v1307_v30 = vrot.slane %v1306_v50, 1  ;;  %v1496_v41 = vsel %vm730_vm7, %v1272_v3, %v1495_v38  ;;  %v1520_v25 = vsel %vm728_vm6, %v1461_v16, %v3897_v37  ;;  %v1490_v39 = vsel %vm732_vm8, %v4007_v18, %v1489_v15 }
 0x395   : > { %v1299_v53 = vmax.f32 %v1297_v26, %v1298_v5  ;;  %v4495_v61 = vrot.slane %v3961_v63, 1  ;;  %v1521_v29 = vsel %vm730_vm7, %v1463_v0, %v1520_v25  ;;  %v1443_v1 = vadd.f32 %v1442_v54, %v1441_v56 }
 0x396   : > { %v1308_v21 = vmax.f32 %v1306_v50, %v1307_v30  ;;  %v1416_v52 = vadd.f32 %v1415_v2, %v1414_v42  ;;  %v1433_v59 = vrot.slane %v3965_v8, 1  ;;  %v1465_v37 = vmul.f32 0.03125, %v1425_v60 }
 0x397   : > { %v1290_v36 = vmax.f32 %v3961_v63, %v4495_v61  ;;  %v1491_v34 = vsel %vm734_vm9, %v1299_v53, %v1490_v39  ;;  %v1450_v44 = vadd.f32 %v1449_v45, %v1448_v20  ;;  %v1467_v40 = vmul.f32 0.03125, %v1443_v1 }
 0x398   : > { %1679 = vmatmul.f32.vlgmr.msra.gmra.mxu2 %v1491_v34  ;;  %v1434_v19 = vadd.f32 %v1433_v59, %v3965_v8  ;;  %v1464_v63 = vmul.f32 0.03125, %v1416_v52  ;;  %v1522_v10 = vsel %vm732_vm8, %v1465_v37, %v1521_v29  ;;  %v1526_v42 = vsel %vm726_vm5, %v3968_v51, %v3903_v13 }
 0x399   : > { %v1497_v23 = vsel %vm732_vm8, %v1290_v36, %v1496_v41  ;;  %v1451_v48 = vrot.slane %v1450_v44, 1  ;;  %v1523_v33 = vsel %vm734_vm9, %v1467_v40, %v1522_v10  ;;  %v1527_v20 = vsel %vm728_vm6, %v1462_v31, %v1526_v42 }
 0x39a   : > { %v1498_v18 = vsel %vm734_vm9, %v1308_v21, %v1497_v23  ;;  %1719 = vmatmul.f32.vlgmr.msrb.gmra.mxu1 %v1523_v33  ;;  %v1528_v8 = vsel %vm730_vm7, %v1464_v63, %v1527_v20  ;;  %v1466_v2 = vmul.f32 0.03125, %v1434_v19 }
 0x39b   : > { %1699 = vmatmul.f32.vlgmr.msra.gmra.mxu3 %v1498_v18  ;;  %v1452_v16 = vadd.f32 %v1451_v48, %v1450_v44 }
 0x39c   : > { %v1529_v28 = vsel %vm732_vm8, %v1466_v2, %v1528_v8 }
 0x39d   : > { %v1468_v17 = vmul.f32 0.03125, %v1452_v16 }
 0x39f   : > { %v1530_v62 = vsel %vm734_vm9, %v1468_v17, %v1529_v28 }
 0x3a0   : > { %1739 = vmatmul.f32.vlgmr.msrb.gmra.mxu0 %v1530_v62  ;;  %1759 = vmatmul.f32.vlgmr.msrb.gmra.mxu2 %v1491_v34 }
 0x3a2   : > { %1799 = vmatmul.f32.vlgmr.msra.gmra.mxu1 %v1523_v33 }
 0x3a3   : > { %1779 = vmatmul.f32.vlgmr.msrb.gmra.mxu3 %v1498_v18 }
 0x3a8   : > { %1819 = vmatmul.f32.vlgmr.msra.gmra.mxu0 %v1530_v62 }
 0x3a9   : > { %2620 = shalt.err (!%p2617_p10)
}
 0x3aa   : > { %2321 = dma.vmem_to_hbm [thread:$0]  (%p2844_p3), %s2120_s25, 128, %s2122_s11, %s4057_s12   ;;  %v1662_v13 = vstv %s4050_s8 }
 0x3ab   : > { %s2293_s0 = sshll.u32 %s2874_s24, 4  ;;  %s2313_s1 = sshll.u32 %s2794_s4, 4 }
 0x3ac   : > { %s335_s17 = scalar_lea.vmem [#allocation11], %s2293_s0  ;;  %s2132_s14 = scalar_lea.hbm %s4353_s7, %s2313_s1 }
 0x3ad   : > { %s2134_s19 = sshll.u32 %s335_s17, 4  ;;  %s2136_s20 = sshll.u32 %s2132_s14, 4  ;;  %s2135_s19 = int_to_ptr.vmem [resolvable:$true] %s2134_s19  ;;  %s2137_s20 = int_to_ptr.hbm [resolvable:$true] %s2136_s20 }
 0x3ae   : > { %s2635_s25 = sshra.s32 %s2137_s20, 4  ;;  %s2641_s13 = scalar_lea.hbm %s4353_s7, 32  ;;  %s2636_s25 = int_to_ptr.hbm [resolvable:$true] %s2635_s25 }
 0x3af   : > { %s2637_s11 = scalar_lea.hbm %s2636_s25, 16  ;;  %p2642_p5 = scmp.lt.s32.totalorder %s2636_s25, %s4353_s7 }
 0x3b0   : > { %p2638_p12 = scmp.ne.s32.totalorder %s2636_s25, %s2637_s11  ;;  %p2643_p7 = scmp.lt.s32.totalorder %s2641_s13, %s2637_s11 }
 0x3b2   : > { %p2639_p13 = pnand %p2638_p12, %p2844_p3  ;;  %p2644_p1 = por %p2643_p7, %p2642_p5 }
 0x3b4   : > { %p2640_p0 = pneg %p2639_p13 }
 0x3b6   : > { %p2645_p4 = pnand %p2644_p1, %p2640_p0 }
 0x417   : > { %v1720_v58 = vpop.f32.mrf.mxu1 }
 0x41b   : > { %v1680_v51 = vpop.f32.mrf.mxu2 }
 0x41c   : > { %v1681_v31 = vadd.f32 %v1680_v51, %v1662_v13 }
 0x41d   : > { %v1740_v45 = vpop.f32.mrf.mxu0 }
 0x41e   : > { %v1700_v7 = vpop.f32.mrf.mxu3 }
 0x41f   : > { %v1701_v55 = vadd.f32 %v1700_v7, %v1681_v31  ;;  %v1800_v5 = vpop.f32.mrf.mxu1 }
 0x421   : > { %v1721_v26 = vadd.f32 %v1720_v58, %v1701_v55 }
 0x423   : > { %v1741_v49 = vadd.f32 %v1740_v45, %v1721_v26  ;;  %v1760_v6 = vpop.f32.mrf.mxu2 }
 0x424   : > { %v1761_v3 = vadd.f32 %v1760_v6, %v1662_v13 }
 0x425   : > { %v1823_v15 = vmul.f32 0.5, %v1741_v49  ;;  %v1820_v60 = vpop.f32.mrf.mxu0 }
 0x426   : > { %v1780_v50 = vpop.f32.mrf.mxu3 }
 0x427   : > { %2413 = vtanh.f32 %v1823_v15  ;;  %v1781_v56 = vadd.f32 %v1780_v50, %v1761_v3 }
 0x429   : > { %v1801_v38 = vadd.f32 %v1800_v5, %v1781_v56 }
 0x42b   : > { %v1821_v0 = vadd.f32 %v1820_v60, %v1801_v38 }
 0x42d   : > { %v2414_v30 = vpop.eup %2413  ;;  %v1824_v41 = vmul.f32 0.5, %v1821_v0 }
 0x42e   : > { %v1827_v54 = vmul.f32 0.5, %v2414_v30 }
 0x42f   : > { %2415 = vtanh.f32 %v1824_v41 }
 0x430   : > { %v4073_v25 = vadd.f32 0.5, %v1827_v54 }
 0x432   : > { %2076 = vst [vmem:[%s335_s17] sm:$0xff] %v4073_v25 }
 0x435   : > { %v2416_v53 = vpop.eup %2415 }
 0x436   : > { %v1828_v39 = vmul.f32 0.5, %v2416_v53 }
 0x438   : > { %v1830_v61 = vadd.f32 0.5, %v1828_v39 }
 0x43a   : > { %2077 = vst [vmem:[%s335_s17 + $0x8] sm:$0xff] %v1830_v61 }
 0x43b   : > { %2648 = shalt.err (!%p2645_p4)
}
 0x43c   : > { %2322 = dma.vmem_to_hbm [thread:$0]  (%p2844_p3), %s2135_s19, 256, %s2137_s20, %s4057_s12   ;;  %v4090_v36 = vrot.slane %v1830_v61, 7  ;;  %vm1834_vm12 = vcmask 1040384   ;;  %v2482_v20 = vld [vmem:[%s2880_s10 + $0x18] sm:$0xff]  ;;  %v4496_v2 = vld [vmem:[#allocation16_spill] sm:$0xff]  ;;  %v2483_v28 = vld [vmem:[%s2880_s10 + $0x20] sm:$0xff] }
 0x43d   : > { %s4497_s12 = sshll.u32 %s2874_s24, 9  ;;  %v2484_v62 = vld [vmem:[%s2880_s10 + $0x28] sm:$0xff]  ;;  %v4499_v51 = vld [vmem:[#allocation18_spill] sm:$0xff]  ;;  %v2485_v7 = vld [vmem:[%s2880_s10 + $0x30] sm:$0xff]  ;;  %vm1848_vm13 = vcmask 1046528   ;;  %s2312_s17 = sshll.u32 %s2794_s4, 9 }
 0x43e   : > { %v1835_v29 = vsel %vm1834_vm12, %v4073_v25, %v4090_v36  ;;  %v1836_v21 = vsel %vm722_vm3, %v4073_v25, %v4090_v36  ;;  %v1838_v19 = vsel %vm724_vm4, %v4073_v25, %v4090_v36  ;;  %s4116_s1 = scalar_lea.vmem [#allocation8], %s4497_s12  ;;  %v4500_v55 = vld [vmem:[#allocation19_spill] sm:$0xff]  ;;  %v2486_v26 = vld [vmem:[%s2880_s10 + $0x38] sm:$0xff]  ;;  %v4501_v15 = vld [vmem:[#allocation20_spill] sm:$0xff]  ;;  %v1840_v5 = vsel %vm726_vm5, %v4073_v25, %v4090_v36  ;;  %s2101_s8 = scalar_lea.hbm %s4351_s5, %s2312_s17 }
 0x43f   : > { %v1851_v1 = vperm.slane %v1835_v29, 0  ;;  %v1852_v52 = vperm.slane %v1835_v29, 1  ;;  %v1837_v59 = vrot.slane %v1836_v21, 1  ;;  %v1839_v8 = vrot.slane %v1838_v19, 2  ;;  %v2487_v50 = vld [vmem:[%s2880_s10 + $0x40] sm:$0xff]  ;;  %v4502_v60 = vld [vmem:[#allocation21_spill] sm:$0xff] }
 0x440   : > { %v2488_v30 = vld [vmem:[%s2880_s10 + $0x48] sm:$0xff]  ;;  %v4503_v54 = vld [vmem:[#allocation22_spill] sm:$0xff]  ;;  %v2489_v39 = vld [vmem:[%s2880_s10 + $0x50] sm:$0xff]  ;;  %s2102_s14 = sshll.u32 %s4116_s1, 4  ;;  %s2104_s19 = sshll.u32 %s2101_s8, 4  ;;  %s2103_s14 = int_to_ptr.vmem [resolvable:$true] %s2102_s14  ;;  %s2105_s19 = int_to_ptr.hbm [resolvable:$true] %s2104_s19 }
 0x441   : > { %v1883_v34 = vmul.f32 %v1851_v1, %v3470_v14  ;;  %v1884_v23 = vmul.f32 %v1852_v52, %v3473_v24  ;;  %v1885_v37 = vmul.f32 %v1851_v1, %v3477_v11  ;;  %v1886_v44 = vmul.f32 %v1852_v52, %v3483_v57  ;;  %v2479_v24 = vld [vmem:[%s2880_s10] sm:$0xff]  ;;  %v2480_v57 = vld [vmem:[%s2880_s10 + $0x8] sm:$0xff]  ;;  %s2079_s20 = scalar_lea.sflag [#allocation5], %s2874_s24  ;;  %s2663_s25 = sshra.s32 %s2105_s19, 4  ;;  %s2664_s25 = int_to_ptr.hbm [resolvable:$true] %s2663_s25 }
 0x442   : > { %v1853_v18 = vperm.slane %v1837_v59, 0  ;;  %v1887_v40 = vmul.f32 %v1851_v1, %v3511_v43  ;;  %v1854_v63 = vperm.slane %v1837_v59, 1  ;;  %v1888_v10 = vmul.f32 %v1852_v52, %v3515_v32  ;;  %v2481_v43 = vld [vmem:[%s2880_s10 + $0x10] sm:$0xff]  ;;  %v4504_v29 = vld [vmem:[#allocation23_spill] sm:$0xff]  ;;  %s2669_s15 = scalar_lea.hbm %s4351_s5, 1024  ;;  %p2670_p2 = scmp.lt.s32.totalorder %s2664_s25, %s4351_s5 }
 0x443   : > { %v1889_v14 = vmul.f32 %v1851_v1, %v3534_v4  ;;  %v1947_v48 = vadd.f32 %v2479_v24, %v1883_v34  ;;  %v1890_v11 = vmul.f32 %v1852_v52, %v3537_v22  ;;  %v1948_v42 = vadd.f32 %v2480_v57, %v1884_v23  ;;  %v4498_v4 = vld [vmem:[#allocation17_spill] sm:$0xff]  ;;  %v2492_v19 = vld [vmem:[%s2880_s10 + $0x68] sm:$0xff]  ;;  %v2493_v24 = vld [vmem:[%s2880_s10 + $0x70] sm:$0xff] }
 0x444   : > { %v1949_v33 = vadd.f32 %v2481_v43, %v1885_v37  ;;  %v1950_v16 = vadd.f32 %v2482_v20, %v1886_v44  ;;  %v1891_v17 = vmul.f32 %v1853_v18, %v4496_v2  ;;  %v1951_v32 = vadd.f32 %v2483_v28, %v1887_v40  ;;  %v2490_v1 = vld [vmem:[%s2880_s10 + $0x58] sm:$0xff]  ;;  %v2491_v37 = vld [vmem:[%s2880_s10 + $0x60] sm:$0xff]  ;;  %v4509_v20 = vld [vmem:[#allocation28_spill] sm:$0xff] }
 0x445   : > { %2011 = vst [vmem:[%s4116_s1] sm:$0xff] %v1947_v48  ;;  %v1892_v22 = vmul.f32 %v1854_v63, %v4498_v4  ;;  %v1952_v13 = vadd.f32 %v2484_v62, %v1888_v10  ;;  %v1893_v31 = vmul.f32 %v1853_v18, %v4499_v51  ;;  %v1953_v58 = vadd.f32 %v2485_v7, %v1889_v14  ;;  %v4505_v34 = vld [vmem:[#allocation25_spill] sm:$0xff] }
 0x446   : > { %2012 = vst [vmem:[%s4116_s1 + $0x8] sm:$0xff] %v1948_v42  ;;  %v1894_v45 = vmul.f32 %v1854_v63, %v4500_v55  ;;  %v1954_v49 = vadd.f32 %v2486_v26, %v1890_v11  ;;  %v1855_v6 = vperm.slane %v1839_v8, 0  ;;  %v1895_v3 = vmul.f32 %v1853_v18, %v4501_v15  ;;  %v4508_v11 = vld [vmem:[#allocation27_spill] sm:$0xff]  ;;  %v2494_v42 = vld [vmem:[%s2880_s10 + $0x78] sm:$0xff]  ;;  %v4513_v15 = vld [vmem:[#allocation32_spill] sm:$0xff] }
 0x447   : > { %2013 = vst [vmem:[%s4116_s1 + $0x10] sm:$0xff] %v1949_v33  ;;  %v1955_v56 = vadd.f32 %v2487_v50, %v1891_v17  ;;  %v1856_v38 = vperm.slane %v1839_v8, 1  ;;  %v1896_v0 = vmul.f32 %v1854_v63, %v4502_v60  ;;  %v1956_v41 = vadd.f32 %v2488_v30, %v1892_v22  ;;  %v2495_v8 = vld [vmem:[%s2880_s10 + $0x80] sm:$0xff]  ;;  %v2496_v22 = vld [vmem:[%s2880_s10 + $0x88] sm:$0xff] }
 0x448   : > { %2014 = vst [vmem:[%s4116_s1 + $0x18] sm:$0xff] %v1950_v16  ;;  %v1897_v53 = vmul.f32 %v1853_v18, %v4503_v54  ;;  %v1957_v61 = vadd.f32 %v2489_v39, %v1893_v31  ;;  %v1898_v21 = vmul.f32 %v1854_v63, %v4504_v29  ;;  %v1958_v52 = vadd.f32 %v2490_v1, %v1894_v45  ;;  %v4506_v18 = vld [vmem:[#allocation26_spill] sm:$0xff]  ;;  %v4507_v63 = vld [vmem:[#allocation24_spill] sm:$0xff]  ;;  %v2498_v45 = vld [vmem:[%s2880_s10 + $0x98] sm:$0xff] }
 0x449   : > { %2015 = vst [vmem:[%s4116_s1 + $0x20] sm:$0xff] %v1951_v32  ;;  %v1841_v59 = vrot.slane %v1840_v5, 3  ;;  %v1899_v23 = vmul.f32 %v1855_v6, %v4505_v34  ;;  %v1959_v44 = vadd.f32 %v2491_v37, %v1895_v3  ;;  %v1900_v40 = vmul.f32 %v1856_v38, %v4506_v18  ;;  %v4510_v32 = vld [vmem:[#allocation29_spill] sm:$0xff]  ;;  %v2497_v31 = vld [vmem:[%s2880_s10 + $0x90] sm:$0xff]  ;;  %v2499_v50 = vld [vmem:[%s2880_s10 + $0xa0] sm:$0xff] }
 0x44a   : > { %2016 = vst [vmem:[%s4116_s1 + $0x28] sm:$0xff] %v1952_v13  ;;  %v1960_v10 = vadd.f32 %v2492_v19, %v1896_v0  ;;  %v1901_v14 = vmul.f32 %v1855_v6, %v4507_v63  ;;  %v1961_v48 = vadd.f32 %v2493_v24, %v1897_v53  ;;  %v1902_v57 = vmul.f32 %v1856_v38, %v4508_v11  ;;  %v4511_v13 = vld [vmem:[#allocation40_spill] sm:$0xff]  ;;  %v2500_v60 = vld [vmem:[%s2880_s10 + $0xa8] sm:$0xff] }
 0x44b   : > { %2017 = vst [vmem:[%s4116_s1 + $0x30] sm:$0xff] %v1953_v58  ;;  %v1962_v43 = vadd.f32 %v2494_v42, %v1898_v21  ;;  %v1857_v33 = vperm.slane %v1841_v59, 0  ;;  %v1903_v16 = vmul.f32 %v1855_v6, %v4509_v20  ;;  %v1963_v2 = vadd.f32 %v2495_v8, %v1899_v23  ;;  %v4512_v58 = vld [vmem:[#allocation45_spill] sm:$0xff]  ;;  %v4516_v53 = vld [vmem:[#allocation31_spill] sm:$0xff]  ;;  %v4517_v1 = vld [vmem:[#allocation36_spill] sm:$0xff] }
 0x44c   : > { %2018 = vst [vmem:[%s4116_s1 + $0x38] sm:$0xff] %v1954_v49  ;;  %v1842_v17 = vsel %vm728_vm6, %v4073_v25, %v4090_v36  ;;  %v1858_v28 = vperm.slane %v1841_v59, 1  ;;  %v1904_v4 = vmul.f32 %v1856_v38, %v4510_v32  ;;  %v1964_v62 = vadd.f32 %v2496_v22, %v1900_v40  ;;  %v2503_v59 = vld [vmem:[%s2880_s10 + $0xc0] sm:$0xff]  ;;  %v2504_v40 = vld [vmem:[%s2880_s10 + $0xc8] sm:$0xff] }
 0x44d   : > { %2019 = vst [vmem:[%s4116_s1 + $0x40] sm:$0xff] %v1955_v56  ;;  %v1905_v51 = vmul.f32 %v1855_v6, %v4511_v13  ;;  %v1965_v7 = vadd.f32 %v2497_v31, %v1901_v14  ;;  %v1906_v55 = vmul.f32 %v1856_v38, %v4512_v58  ;;  %v1966_v26 = vadd.f32 %v2498_v45, %v1902_v57  ;;  %v4514_v6 = vld [vmem:[#allocation33_spill] sm:$0xff]  ;;  %v4515_v38 = vld [vmem:[#allocation30_spill] sm:$0xff]  ;;  %v2505_v14 = vld [vmem:[%s2880_s10 + $0xd0] sm:$0xff] }
 0x44e   : > { %2020 = vst [vmem:[%s4116_s1 + $0x48] sm:$0xff] %v1956_v41  ;;  %v1843_v49 = vrot.slane %v1842_v17, 4  ;;  %v1907_v3 = vmul.f32 %v1857_v33, %v4513_v15  ;;  %v1967_v56 = vadd.f32 %v2499_v50, %v1903_v16  ;;  %v1908_v5 = vmul.f32 %v1858_v28, %v4514_v6  ;;  %v2501_v41 = vld [vmem:[%s2880_s10 + $0xb0] sm:$0xff]  ;;  %v2506_v57 = vld [vmem:[%s2880_s10 + $0xd8] sm:$0xff]  ;;  %v4521_v20 = vld [vmem:[#allocation39_spill] sm:$0xff] }
 0x44f   : > { %2021 = vst [vmem:[%s4116_s1 + $0x50] sm:$0xff] %v1957_v61  ;;  %v1968_v0 = vadd.f32 %v2500_v60, %v1904_v4  ;;  %v1909_v30 = vmul.f32 %v1857_v33, %v4515_v38  ;;  %v1969_v54 = vadd.f32 %v2501_v41, %v1905_v51  ;;  %v1910_v39 = vmul.f32 %v1858_v28, %v4516_v53  ;;  %v2502_v61 = vld [vmem:[%s2880_s10 + $0xb8] sm:$0xff]  ;;  %v2507_v8 = vld [vmem:[%s2880_s10 + $0xe0] sm:$0xff]  ;;  %v2508_v32 = vld [vmem:[%s2880_s10 + $0xe8] sm:$0xff] }
 0x450   : > { %2022 = vst [vmem:[%s4116_s1 + $0x58] sm:$0xff] %v1958_v52  ;;  %v1970_v29 = vadd.f32 %v2502_v61, %v1906_v55  ;;  %v1859_v21 = vperm.slane %v1843_v49, 0  ;;  %v1911_v52 = vmul.f32 %v1857_v33, %v4517_v1  ;;  %v1971_v34 = vadd.f32 %v2503_v59, %v1907_v3  ;;  %v4524_v51 = vld [vmem:[#allocation35_spill] sm:$0xff]  ;;  %v4525_v45 = vld [vmem:[#allocation37_spill] sm:$0xff]  ;;  %v2513_v38 = vld [vmem:[%s2880_s10 + $0x110] sm:$0xff] }
 0x451   : > { %2023 = vst [vmem:[%s4116_s1 + $0x60] sm:$0xff] %v1959_v44  ;;  %v1844_v23 = vsel %vm730_vm7, %v4073_v25, %v4090_v36  ;;  %v1860_v37 = vperm.slane %v1843_v49, 1  ;;  %v4518_v44 = vld [vmem:[#allocation38_spill] sm:$0xff]  ;;  %v1972_v19 = vadd.f32 %v2504_v40, %v1908_v5  ;;  %v1973_v24 = vadd.f32 %v2505_v14, %v1909_v30  ;;  %v2512_v5 = vld [vmem:[%s2880_s10 + $0x108] sm:$0xff] }
 0x452   : > { %2024 = vst [vmem:[%s4116_s1 + $0x68] sm:$0xff] %v1960_v10  ;;  %v1912_v18 = vmul.f32 %v1858_v28, %v4518_v44  ;;  %v4519_v10 = vld [vmem:[#allocation42_spill] sm:$0xff]  ;;  %v1974_v42 = vadd.f32 %v2506_v57, %v1910_v39  ;;  %v1915_v16 = vmul.f32 %v1859_v21, %v4521_v20  ;;  %v1846_v3 = vsel %vm732_vm8, %v4073_v25, %v4090_v36  ;;  %v2518_v14 = vld [vmem:[%s2880_s10 + $0x148] sm:$0xff]  ;;  %v2519_v57 = vld [vmem:[%s2880_s10 + $0x150] sm:$0xff] }
 0x453   : > { %2025 = vst [vmem:[%s4116_s1 + $0x70] sm:$0xff] %v1961_v48  ;;  %v1913_v63 = vmul.f32 %v1857_v33, %v4519_v10  ;;  %v4520_v48 = vld [vmem:[#allocation43_spill] sm:$0xff]  ;;  %v4522_v33 = vld [vmem:[#allocation41_spill] sm:$0xff]  ;;  %v1918_v31 = vmul.f32 %v1860_v37, %v4524_v51  ;;  %v2511_v49 = vld [vmem:[%s2880_s10 + $0x100] sm:$0xff]  ;;  %v1922_v41 = vmul.f32 %v1860_v37, %v3945_v9  ;;  %v1847_v39 = vrot.slane %v1846_v3, 6 }
 0x454   : > { %2026 = vst [vmem:[%s4116_s1 + $0x78] sm:$0xff] %v1962_v43  ;;  %v1914_v11 = vmul.f32 %v1858_v28, %v4520_v48  ;;  %v1845_v43 = vrot.slane %v1844_v23, 5  ;;  %v1916_v17 = vmul.f32 %v1860_v37, %v4522_v33  ;;  %v1976_v4 = vadd.f32 %v2508_v32, %v1912_v18  ;;  %v4523_v28 = vld [vmem:[#allocation34_spill] sm:$0xff]  ;;  %v4528_v23 = vld [vmem:[#allocation67_spill] sm:$0xff]  ;;  %v4531_v48 = vld [vmem:[#allocation69_spill] sm:$0xff] }
 0x455   : > { %2027 = vst [vmem:[%s4116_s1 + $0x80] sm:$0xff] %v1963_v2  ;;  %v1975_v2 = vadd.f32 %v2507_v8, %v1911_v52  ;;  %v1917_v22 = vmul.f32 %v1859_v21, %v4523_v28  ;;  %v1979_v15 = vadd.f32 %v2511_v49, %v1915_v16  ;;  %v1863_v44 = vperm.slane %v1847_v39, 0  ;;  %v2517_v40 = vld [vmem:[%s2880_s10 + $0x140] sm:$0xff]  ;;  %v2520_v16 = vld [vmem:[%s2880_s10 + $0x158] sm:$0xff]  ;;  %v4534_v33 = vld [vmem:[#allocation59_spill] sm:$0xff] }
 0x456   : > { %2028 = vst [vmem:[%s4116_s1 + $0x88] sm:$0xff] %v1964_v62  ;;  %v2509_v62 = vld [vmem:[%s2880_s10 + $0xf0] sm:$0xff]  ;;  %v1861_v55 = vperm.slane %v1845_v43, 0  ;;  %v1862_v50 = vperm.slane %v1845_v43, 1  ;;  %v1980_v60 = vadd.f32 %v2512_v5, %v1916_v17  ;;  %v4530_v10 = vld [vmem:[#allocation62_spill] sm:$0xff]  ;;  %v4532_v43 = vld [vmem:[#allocation71_spill] sm:$0xff] }
 0x457   : > { %2029 = vst [vmem:[%s4116_s1 + $0x90] sm:$0xff] %v1965_v7  ;;  %v1977_v13 = vadd.f32 %v2509_v62, %v1913_v63  ;;  %v2510_v7 = vld [vmem:[%s2880_s10 + $0xf8] sm:$0xff]  ;;  %v1981_v30 = vadd.f32 %v2513_v38, %v1917_v22  ;;  %v4535_v32 = vld [vmem:[#allocation52_spill] sm:$0xff]  ;;  %v4537_v62 = vld [vmem:[#allocation55_spill] sm:$0xff] }
 0x458   : > { %2030 = vst [vmem:[%s4116_s1 + $0x98] sm:$0xff] %v1966_v26  ;;  %v1978_v58 = vadd.f32 %v2510_v7, %v1914_v11  ;;  %v1919_v26 = vmul.f32 %v1859_v21, %v4525_v45  ;;  %v1923_v61 = vmul.f32 %v1861_v55, %v3759_v46  ;;  %v1925_v9 = vmul.f32 %v1861_v55, %v3713_v35  ;;  %v4536_v28 = vld [vmem:[#allocation61_spill] sm:$0xff]  ;;  %v4538_v51 = vld [vmem:[#allocation68_spill] sm:$0xff]  ;;  %v2521_v3 = vld [vmem:[%s2880_s10 + $0x180] sm:$0xff] }
 0x459   : > { %2031 = vst [vmem:[%s4116_s1 + $0xa0] sm:$0xff] %v1967_v56  ;;  %v4526_v56 = vld [vmem:[#allocation44_spill] sm:$0xff]  ;;  %v1849_v35 = vsel %vm1848_vm13, %v4090_v36, %v4073_v25  ;;  %v1928_v63 = vmul.f32 %v1862_v50, %v4530_v10  ;;  %v1929_v11 = vmul.f32 %v1861_v55, %v4531_v48  ;;  %v1930_v20 = vmul.f32 %v1862_v50, %v4532_v43  ;;  %v4533_v36 = vld [vmem:[#allocation51_spill] sm:$0xff]  ;;  %v4541_v49 = vld [vmem:[#allocation57_spill] sm:$0xff] }
 0x45a   : > { %2032 = vst [vmem:[%s4116_s1 + $0xa8] sm:$0xff] %v1968_v0  ;;  %v1920_v6 = vmul.f32 %v1860_v37, %v4526_v56  ;;  %v1921_v0 = vmul.f32 %v1859_v21, %v3939_v47  ;;  %v1924_v47 = vmul.f32 %v1862_v50, %v3763_v12  ;;  %v2516_v21 = vld [vmem:[%s2880_s10 + $0x128] sm:$0xff]  ;;  %v1986_v37 = vadd.f32 %v4528_v23, %v1922_v41  ;;  %v4529_v12 = vld [vmem:[#allocation60_spill] sm:$0xff]  ;;  %v4547_v23 = vld [vmem:[#allocation53_spill] sm:$0xff] }
 0x45b   : > { %2033 = vst [vmem:[%s4116_s1 + $0xb0] sm:$0xff] %v1969_v54  ;;  %v2514_v54 = vld [vmem:[%s2880_s10 + $0x118] sm:$0xff]  ;;  %v1927_v18 = vmul.f32 %v1861_v55, %v4529_v12  ;;  %v1850_v25 = vrot.slane %v1849_v35, 7  ;;  %v1992_v22 = vadd.f32 %v4536_v28, %v1928_v63  ;;  %v4539_v7 = vld [vmem:[#allocation56_spill] sm:$0xff]  ;;  %v4540_v55 = vld [vmem:[#allocation70_spill] sm:$0xff] }
 0x45c   : > { %2034 = vst [vmem:[%s4116_s1 + $0xb8] sm:$0xff] %v1970_v29  ;;  %v1982_v53 = vadd.f32 %v2514_v54, %v1918_v31  ;;  %v2515_v29 = vld [vmem:[%s2880_s10 + $0x120] sm:$0xff]  ;;  %v1984_v52 = vadd.f32 %v2516_v21, %v1920_v6  ;;  %v1985_v59 = vadd.f32 %v3936_v27, %v1921_v0  ;;  %v1864_v27 = vperm.slane %v1847_v39, 1  ;;  %v4543_v38 = vld [vmem:[#allocation64_spill] sm:$0xff] }
 0x45d   : > { %2035 = vst [vmem:[%s4116_s1 + $0xc0] sm:$0xff] %v1971_v34  ;;  %v1983_v1 = vadd.f32 %v2515_v29, %v1919_v26  ;;  %v4527_v34 = vld [vmem:[#allocation48_spill] sm:$0xff]  ;;  %v1991_v17 = vadd.f32 %v4534_v33, %v1927_v18  ;;  %v1993_v31 = vadd.f32 %v4538_v51, %v1929_v11  ;;  %v1994_v45 = vadd.f32 %v4540_v55, %v1930_v20  ;;  %v4542_v6 = vld [vmem:[#allocation58_spill] sm:$0xff]  ;;  %v2528_v11 = vld [vmem:[%s2880_s10 + $0x1c8] sm:$0xff] }
 0x45e   : > { %2036 = vst [vmem:[%s4116_s1 + $0xc8] sm:$0xff] %v1972_v19  ;;  %v1926_v46 = vmul.f32 %v1862_v50, %v4527_v34  ;;  %v1987_v19 = vadd.f32 %v2517_v40, %v1923_v61  ;;  %v1865_v26 = vperm.slane %v1850_v25, 0  ;;  %v1866_v56 = vperm.slane %v1850_v25, 1  ;;  %v2523_v41 = vld [vmem:[%s2880_s10 + $0x190] sm:$0xff]  ;;  %v2524_v61 = vld [vmem:[%s2880_s10 + $0x198] sm:$0xff]  ;;  %v2525_v21 = vld [vmem:[%s2880_s10 + $0x1a0] sm:$0xff] }
 0x45f   : > { %2037 = vst [vmem:[%s4116_s1 + $0xd0] sm:$0xff] %v1973_v24  ;;  %v1988_v24 = vadd.f32 %v2518_v14, %v1924_v47  ;;  %v1936_v5 = vmul.f32 %v1864_v27, %v4542_v6  ;;  %v2526_v34 = vld [vmem:[%s2880_s10 + $0x1a8] sm:$0xff]  ;;  %v4549_v18 = vld [vmem:[#allocation54_spill] sm:$0xff]  ;;  %v2529_v20 = vld [vmem:[%s2880_s10 + $0x1d0] sm:$0xff] }
 0x460   : > { %2038 = vst [vmem:[%s4116_s1 + $0xd8] sm:$0xff] %v1974_v42  ;;  %v1989_v42 = vadd.f32 %v2519_v57, %v1925_v9  ;;  %v1990_v8 = vadd.f32 %v2520_v16, %v1926_v46  ;;  %v4546_v9 = vld [vmem:[#allocation47_spill] sm:$0xff]  ;;  %v1942_v40 = vmul.f32 %v1866_v56, %v4549_v18  ;;  %v2527_v63 = vld [vmem:[%s2880_s10 + $0x1c0] sm:$0xff]  ;;  %v4555_v28 = vld [vmem:[#allocation72_spill] sm:$0xff] }
 0x461   : > { %2039 = vst [vmem:[%s4116_s1 + $0xe0] sm:$0xff] %v1975_v2  ;;  %v1931_v2 = vmul.f32 %v1863_v44, %v4533_v36  ;;  %v2000_v46 = vadd.f32 %v2526_v34, %v1936_v5  ;;  %v2530_v36 = vld [vmem:[%s2880_s10 + $0x1d8] sm:$0xff]  ;;  %v2531_v33 = vld [vmem:[%s2880_s10 + $0x1e0] sm:$0xff] }
 0x462   : > { %2040 = vst [vmem:[%s4116_s1 + $0xe8] sm:$0xff] %v1976_v4  ;;  %v1932_v4 = vmul.f32 %v1864_v27, %v4535_v32  ;;  %v2532_v32 = vld [vmem:[%s2880_s10 + $0x1e8] sm:$0xff] }
 0x463   : > { %2041 = vst [vmem:[%s4116_s1 + $0xf0] sm:$0xff] %v1977_v13  ;;  %v1933_v13 = vmul.f32 %v1863_v44, %v4537_v62  ;;  %v1995_v50 = vadd.f32 %v2521_v3, %v1931_v2  ;;  %v2006_v2 = vadd.f32 %v2530_v36, %v1942_v40  ;;  %v4556_v62 = vld [vmem:[#allocation74_spill] sm:$0xff] }
 0x464   : > { %2042 = vst [vmem:[%s4116_s1 + $0xf8] sm:$0xff] %v1978_v58  ;;  %v1934_v58 = vmul.f32 %v1864_v27, %v4539_v7 }
 0x465   : > { %2043 = vst [vmem:[%s4116_s1 + $0x100] sm:$0xff] %v1979_v15  ;;  %v1935_v15 = vmul.f32 %v1863_v44, %v4541_v49  ;;  %v1997_v54 = vadd.f32 %v2523_v41, %v1933_v13 }
 0x466   : > { %2044 = vst [vmem:[%s4116_s1 + $0x108] sm:$0xff] %v1980_v60  ;;  %v2522_v60 = vld [vmem:[%s2880_s10 + $0x188] sm:$0xff]  ;;  %v1998_v29 = vadd.f32 %v2524_v61, %v1934_v58  ;;  %s2665_s10 = scalar_lea.hbm %s2664_s25, 512 }
 0x467   : > { %2045 = vst [vmem:[%s4116_s1 + $0x110] sm:$0xff] %v1981_v30  ;;  %v1996_v0 = vadd.f32 %v2522_v60, %v1932_v4  ;;  %v1937_v30 = vmul.f32 %v1863_v44, %v4543_v38  ;;  %v4548_v44 = vld [vmem:[#allocation63_spill] sm:$0xff]  ;;  %p2666_p8 = scmp.ne.s32.totalorder %s2664_s25, %s2665_s10  ;;  %p2671_p10 = scmp.lt.s32.totalorder %s2669_s15, %s2665_s10 }
 0x468   : > { %2046 = vst [vmem:[%s4116_s1 + $0x118] sm:$0xff] %v1982_v53  ;;  %v4544_v53 = vld [vmem:[#allocation66_spill] sm:$0xff] }
 0x469   : > { %2047 = vst [vmem:[%s4116_s1 + $0x120] sm:$0xff] %v1983_v1  ;;  %v1938_v39 = vmul.f32 %v1864_v27, %v4544_v53  ;;  %v4545_v1 = vld [vmem:[#allocation46_spill] sm:$0xff]  ;;  %v2001_v12 = vadd.f32 %v4548_v44, %v1937_v30  ;;  %v4551_v27 = vld [vmem:[#allocation49_spill] sm:$0xff]  ;;  %p2667_p11 = pnand %p2666_p8, %p2844_p3  ;;  %p2672_p12 = por %p2671_p10, %p2670_p2 }
 0x46a   : > { %2048 = vst [vmem:[%s4116_s1 + $0x128] sm:$0xff] %v1984_v52  ;;  %v1939_v47 = vmul.f32 %v1865_v26, %v4545_v1  ;;  %v1999_v52 = vadd.f32 %v2525_v21, %v1935_v15  ;;  %v1943_v10 = vmul.f32 %v1865_v26, %v4551_v27 }
 0x46b   : > { %2049 = vst [vmem:[%s4116_s1 + $0x130] sm:$0xff] %v1985_v59  ;;  %v1940_v59 = vmul.f32 %v1866_v56, %v4546_v9  ;;  %p2668_p9 = pneg %p2667_p11 }
 0x46c   : > { %2050 = vst [vmem:[%s4116_s1 + $0x138] sm:$0xff] %v1986_v37  ;;  %v1941_v37 = vmul.f32 %v1865_v26, %v4547_v23  ;;  %v2003_v14 = vadd.f32 %v2527_v63, %v1939_v47 }
 0x46d   : > { %2051 = vst [vmem:[%s4116_s1 + $0x140] sm:$0xff] %v1987_v19  ;;  %v4550_v19 = vld [vmem:[#allocation65_spill] sm:$0xff]  ;;  %v2004_v57 = vadd.f32 %v2528_v11, %v1940_v59  ;;  %p2673_p13 = pnand %p2672_p12, %p2668_p9 }
 0x46e   : > { %2052 = vst [vmem:[%s4116_s1 + $0x148] sm:$0xff] %v1988_v24  ;;  %v2002_v35 = vadd.f32 %v4550_v19, %v1938_v39  ;;  %v4552_v24 = vld [vmem:[#allocation50_spill] sm:$0xff]  ;;  %v2005_v16 = vadd.f32 %v2529_v20, %v1941_v37 }
 0x46f   : > { %2053 = vst [vmem:[%s4116_s1 + $0x150] sm:$0xff] %v1989_v42  ;;  %v1944_v48 = vmul.f32 %v1866_v56, %v4552_v24  ;;  %v4553_v42 = vld [vmem:[#allocation73_spill] sm:$0xff] }
 0x470   : > { %2054 = vst [vmem:[%s4116_s1 + $0x158] sm:$0xff] %v1990_v8  ;;  %v1945_v43 = vmul.f32 %v1865_v26, %v4553_v42  ;;  %v4554_v8 = vld [vmem:[#allocation75_spill] sm:$0xff] }
 0x471   : > { %2055 = vst [vmem:[%s4116_s1 + $0x160] sm:$0xff] %v1991_v17  ;;  %v1946_v25 = vmul.f32 %v1866_v56, %v4554_v8  ;;  %v2007_v17 = vadd.f32 %v2531_v33, %v1943_v10  ;;  %v2008_v4 = vadd.f32 %v2532_v32, %v1944_v48 }
 0x472   : > { %2056 = vst [vmem:[%s4116_s1 + $0x168] sm:$0xff] %v1992_v22  ;;  %v2009_v22 = vadd.f32 %v4555_v28, %v1945_v43 }
 0x473   : > { %2057 = vst [vmem:[%s4116_s1 + $0x170] sm:$0xff] %v1993_v31  ;;  %v2010_v13 = vadd.f32 %v4556_v62, %v1946_v25 }
 0x474   : > { %2058 = vst [vmem:[%s4116_s1 + $0x178] sm:$0xff] %v1994_v45 }
 0x475   : > { %2059 = vst [vmem:[%s4116_s1 + $0x180] sm:$0xff] %v1995_v50 }
 0x476   : > { %2060 = vst [vmem:[%s4116_s1 + $0x188] sm:$0xff] %v1996_v0 }
 0x477   : > { %2061 = vst [vmem:[%s4116_s1 + $0x190] sm:$0xff] %v1997_v54 }
 0x478   : > { %2062 = vst [vmem:[%s4116_s1 + $0x198] sm:$0xff] %v1998_v29 }
 0x479   : > { %2063 = vst [vmem:[%s4116_s1 + $0x1a0] sm:$0xff] %v1999_v52 }
 0x47a   : > { %2064 = vst [vmem:[%s4116_s1 + $0x1a8] sm:$0xff] %v2000_v46 }
 0x47b   : > { %2065 = vst [vmem:[%s4116_s1 + $0x1b0] sm:$0xff] %v2001_v12 }
 0x47c   : > { %2066 = vst [vmem:[%s4116_s1 + $0x1b8] sm:$0xff] %v2002_v35 }
 0x47d   : > { %2067 = vst [vmem:[%s4116_s1 + $0x1c0] sm:$0xff] %v2003_v14 }
 0x47e   : > { %2068 = vst [vmem:[%s4116_s1 + $0x1c8] sm:$0xff] %v2004_v57 }
 0x47f   : > { %2069 = vst [vmem:[%s4116_s1 + $0x1d0] sm:$0xff] %v2005_v16 }
 0x480   : > { %2070 = vst [vmem:[%s4116_s1 + $0x1d8] sm:$0xff] %v2006_v2 }
 0x481   : > { %2071 = vst [vmem:[%s4116_s1 + $0x1e0] sm:$0xff] %v2007_v17 }
 0x482   : > { %2072 = vst [vmem:[%s4116_s1 + $0x1e8] sm:$0xff] %v2008_v4 }
 0x483   : > { %2073 = vst [vmem:[%s4116_s1 + $0x1f0] sm:$0xff] %v2009_v22 }
 0x484   : > { %2074 = vst [vmem:[%s4116_s1 + $0x1f8] sm:$0xff] %v2010_v13 }
 0x485   : > { %2676 = shalt.err (!%p2673_p13)
}
 0x486   : > { %s2728_s24 = smov 256   ;;  %s2729_s0 = smov 16  }
 0x487   : > { %2320 = dma.vmem_to_hbm [thread:$0]  (%p2844_p3), %s2103_s14, 8192, %s2105_s19, %s2079_s20, %s2728_s24, %s2728_s24, %s2729_s0  }
 0x488 PF: > { %s2148_s12 = sand.u32 1, %s2711_s26   ;;  %p4557_p0 = scmp.ge.s32.totalorder %s2723_s29, 2 }
 0x489   : > { %s2149_s1 = scalar_lea.sflag [#allocation5], %s2148_s12 }
 0x48a   : > { %p2335_p5 = pnand %p4557_p0, %p2810_p6 }
 0x48c   : > { %p2336_p7 = pneg %p2335_p5 }
 0x48e   : > { %2702 = dma.done.wait (%p2336_p7), %s2149_s1, 8192  }
 0x48f   : > { %2704 = vsyncadd (%p2336_p7), %s2149_s1, 4294959104  ;;  %s4558_s17 = sadd.s32 4294967294, %s2723_s29  }
 0x490   : > { %s2158_s4 = sand.u32 1, %s4558_s17  }
 0x491   : > { %s2159_s18 = scalar_lea.sflag [#allocation10], %s2158_s4 }
 0x492   : > { %2706 = dma.done.wait (%p2336_p7), %s2159_s18, 384  }
 0x493   : > { %2708 = vsyncadd (%p2336_p7), %s2159_s18, 4294966912  ;;  %p26_p3 = scmp.ge.s32.totalorder %s2828_s16, 4   ;;  %s4559_s26 = smov %s2715_s27 }
 0x494   : > { %s4560_s27 = smov %s2719_s28  ;;  %s4561_s28 = smov %s2840_s21 }
 0x495   : > { %s4562_s29 = smov %s2828_s16  ;;  %28 = sbr.rel (!%p26_p3) target bundleno = 12 (0xc), region = 121 }
 0x49a   :  { %2175 = vsyncpa [#allocation4], 1 }
 0x49b   :  { %2177 = vsyncpa [#allocation4 + $0x1], 1 }
 0x49c   :  { %2178 = vsyncpa [#allocation7], 1 }
 0x49d   :  { %2179 = vsyncpa [#allocation5], 1 }
 0x49e   :  { %2181 = vsyncpa [#allocation5 + $0x1], 1 }
 0x49f   :  { %2182 = vsyncpa [#allocation10], 1 }
 0x4a0   :  { %2184 = vsyncpa [#allocation10 + $0x1], 1 }

</bundles_post_ra>
